<compile_context>
chip_gen: v7x
topology: tpu7x:2x2x1
jax: 0.10.0
libtpu: 0.0.40
codegen_flags: <defaults>
</compile_context>

<pallas_src>
import jax
import jax.numpy as jnp
from jax.experimental import pallas as pl
from jax.experimental.pallas import tpu as pltpu


TILE_M = 256                      # row tile (multiple of 16 for bf16 sublane packing)
VMEM_LIMIT = 32 * 1024 * 1024     # explicit budget; generous headroom on every gen


def _round_up(x, m):
    return ((x + m - 1) // m) * m


# ---------------------------------------------------------------------------
# Pallas kernels
# ---------------------------------------------------------------------------
def conv_bn_relu_pool_kernel(q0_ref, q1_ref, q2_ref, q3_ref, w_ref, shift_ref, o_ref):
    """Fused conv (as im2col matmul, BN scale pre-folded into w) + bias + ReLU + 2x2 max-pool.

    q0..q3 hold the im2col patches of the four pooling quadrants of the SAME
    pooled output rows, so max over the four scaled matmul results == MaxPool2d(2,2)
    applied after BN (scale folded) and before/after ReLU (ReLU commutes with max).
    """
    w = w_ref[...]
    a0 = jnp.dot(q0_ref[...], w, preferred_element_type=jnp.float32)
    a1 = jnp.dot(q1_ref[...], w, preferred_element_type=jnp.float32)
    a2 = jnp.dot(q2_ref[...], w, preferred_element_type=jnp.float32)
    a3 = jnp.dot(q3_ref[...], w, preferred_element_type=jnp.float32)
    acc = jnp.maximum(jnp.maximum(a0, a1), jnp.maximum(a2, a3))
    o_ref[...] = jnp.maximum(acc + shift_ref[...], 0.0).astype(o_ref.dtype)


def fc_fused_kernel(x_ref, w1_ref, b1_ref, w2_ref, b2_ref, o_ref):
    """logits = relu(x @ w1 + b1) @ w2 + b2 ; the hidden activation stays on-chip."""
    h = jnp.dot(x_ref[...], w1_ref[...], preferred_element_type=jnp.float32)
    h = jnp.maximum(h + b1_ref[...], 0.0)
    logits = jnp.dot(h.astype(w2_ref.dtype), w2_ref[...],
                     preferred_element_type=jnp.float32)
    o_ref[...] = (logits + b2_ref[...]).astype(o_ref.dtype)


# ---------------------------------------------------------------------------
# Pallas wrappers: tile the row (M) axis, keep weights resident (index (0,0))
# ---------------------------------------------------------------------------
def conv_bn_relu_pool(quads, w, shift, *, tile_m=TILE_M):
    """quads: 4 x (M, K) bf16 quadrant patch matrices. w: (K, C) bf16 (BN-scale folded).
    shift: (1, C) f32.  Returns (M, C) bf16 pooled activation, rows in (n, ph, pw) order."""
    m, k = quads[0].shape
    c = w.shape[1]
    tile_m = min(tile_m, _round_up(m, 16))
    m_pad = _round_up(m, tile_m)
    if m_pad != m:
        quads = [jnp.pad(q, ((0, m_pad - m), (0, 0))) for q in quads]
    row_spec = pl.BlockSpec((tile_m, k), lambda i: (i, 0))
    resident = lambda shape: pl.BlockSpec(shape, lambda i: (0, 0))
    out = pl.pallas_call(
        conv_bn_relu_pool_kernel,
        out_shape=jax.ShapeDtypeStruct((m_pad, c), jnp.bfloat16),
        grid=(m_pad // tile_m,),
        in_specs=[row_spec, row_spec, row_spec, row_spec,
                  resident((k, c)), resident((1, c))],
        out_specs=pl.BlockSpec((tile_m, c), lambda i: (i, 0)),
        compiler_params=pltpu.CompilerParams(
            dimension_semantics=("parallel",),
            vmem_limit_bytes=VMEM_LIMIT),
    )(*quads, w, shift)
    return out[:m]


def fc_fused(x, w1, b1, w2, b2, *, tile_m=TILE_M):
    """x: (M, 800) bf16. Returns (M, 10) f32 logits."""
    m, k = x.shape
    n_hidden = w1.shape[1]
    n_out = w2.shape[1]
    tile_m = min(tile_m, _round_up(m, 16))
    m_pad = _round_up(m, tile_m)
    if m_pad != m:
        x = jnp.pad(x, ((0, m_pad - m), (0, 0)))
    resident = lambda shape: pl.BlockSpec(shape, lambda i: (0, 0))
    out = pl.pallas_call(
        fc_fused_kernel,
        out_shape=jax.ShapeDtypeStruct((m_pad, n_out), jnp.float32),
        grid=(m_pad // tile_m,),
        in_specs=[pl.BlockSpec((tile_m, k), lambda i: (i, 0)),
                  resident((k, n_hidden)), resident((1, n_hidden)),
                  resident((n_hidden, n_out)), resident((1, n_out))],
        out_specs=pl.BlockSpec((tile_m, n_out), lambda i: (i, 0)),
        compiler_params=pltpu.CompilerParams(
            dimension_semantics=("parallel",),
            vmem_limit_bytes=VMEM_LIMIT),
    )(x, w1, b1, w2, b2)
    return out[:m]


# ---------------------------------------------------------------------------
# Host-side glue: pool-quadrant im2col, BN folding, weight re-ordering
# ---------------------------------------------------------------------------
def _pool_quadrant_patches_nhw(x, k):
    """x: (N, H, W) single-channel. Returns 4 quadrant patch matrices (N*PH*PW, k*k)
    (quadrants in (di, dj) order), feature order (kh, kw) = PyTorch flatten for Cin=1."""
    n, h, w = x.shape
    ph, pw = (h - k + 1) // 2, (w - k + 1) // 2
    quads = []
    for di in (0, 1):
        for dj in (0, 1):
            cols = [x[:, di + kh: di + kh + 2 * ph: 2, dj + kw: dj + kw + 2 * pw: 2]
                    for kh in range(k) for kw in range(k)]
            quads.append(jnp.stack(cols, axis=-1).reshape(n * ph * pw, k * k))
    return quads, ph, pw


def _pool_quadrant_patches_nhwc(x, k):
    """x: (N, H, W, C). Returns 4 quadrant patch matrices (N*PH*PW, k*k*C),
    feature order (kh, kw, ci) to match the re-ordered conv2 weight."""
    n, h, w, c = x.shape
    ph, pw = (h - k + 1) // 2, (w - k + 1) // 2
    quads = []
    for di in (0, 1):
        for dj in (0, 1):
            cols = [x[:, di + kh: di + kh + 2 * ph: 2, dj + kw: dj + kw + 2 * pw: 2, :]
                    for kh in range(k) for kw in range(k)]
            quads.append(jnp.stack(cols, axis=3).reshape(n * ph * pw, k * k * c))
    return quads, ph, pw


def prepare_inference_params(p, eps=1e-5):
    """Fold conv bias + eval-mode BN into (scale-folded weight, shift); re-order
    conv2/fc1 weights for NHWC activations; cast matmul operands to bf16."""
    # layer 1: patch features (kh, kw) since Cin == 1
    s1 = p["bn1_gamma"] / jnp.sqrt(p["bn1_var"] + eps)
    shift1 = p["bn1_beta"] + (p["conv1_b"] - p["bn1_mean"]) * s1
    w1 = p["conv1_w"].reshape(16, 25).T * s1[None, :]                     # (25, 16)
    # layer 2: PyTorch (Cout, Cin, KH, KW) -> rows ordered (kh, kw, ci)
    s2 = p["bn2_gamma"] / jnp.sqrt(p["bn2_var"] + eps)
    shift2 = p["bn2_beta"] + (p["conv2_b"] - p["bn2_mean"]) * s2
    w2 = jnp.transpose(p["conv2_w"], (2, 3, 1, 0)).reshape(9 * 16, 32) * s2[None, :]
    # fc1: permute input features from PyTorch (c, h, w) flatten to NHWC (h, w, c) flatten
    w_fc1 = jnp.transpose(p["fc1_w"].reshape(512, 32, 5, 5), (2, 3, 1, 0)).reshape(800, 512)
    w_fc2 = p["fc2_w"].T                                                   # (512, 10)
    return {
        "w1": w1.astype(jnp.bfloat16), "shift1": shift1[None, :].astype(jnp.float32),
        "w2": w2.astype(jnp.bfloat16), "shift2": shift2[None, :].astype(jnp.float32),
        "w_fc1": w_fc1.astype(jnp.bfloat16), "b_fc1": p["fc1_b"][None, :].astype(jnp.float32),
        "w_fc2": w_fc2.astype(jnp.bfloat16), "b_fc2": p["fc2_b"][None, :].astype(jnp.float32),
    }


def init_params(key):
    ks = jax.random.split(key, 16)
    p = {}
    p["conv1_w"] = 0.1 * jax.random.normal(ks[0], (16, 1, 5, 5), jnp.float32)
    p["conv1_b"] = 0.1 * jax.random.normal(ks[1], (16,), jnp.float32)
    p["bn1_gamma"] = 1.0 + 0.1 * jax.random.normal(ks[2], (16,), jnp.float32)
    p["bn1_beta"] = 0.1 * jax.random.normal(ks[3], (16,), jnp.float32)
    p["bn1_mean"] = 0.1 * jax.random.normal(ks[4], (16,), jnp.float32)
    p["bn1_var"] = 1.0 + 0.1 * jax.random.uniform(ks[5], (16,), jnp.float32)

    p["conv2_w"] = 0.1 * jax.random.normal(ks[6], (32, 16, 3, 3), jnp.float32)
    p["conv2_b"] = 0.1 * jax.random.normal(ks[7], (32,), jnp.float32)
    p["bn2_gamma"] = 1.0 + 0.1 * jax.random.normal(ks[8], (32,), jnp.float32)
    p["bn2_beta"] = 0.1 * jax.random.normal(ks[9], (32,), jnp.float32)
    p["bn2_mean"] = 0.1 * jax.random.normal(ks[10], (32,), jnp.float32)
    p["bn2_var"] = 1.0 + 0.1 * jax.random.uniform(ks[11], (32,), jnp.float32)

    p["fc1_w"] = 0.05 * jax.random.normal(ks[12], (512, 32 * 5 * 5), jnp.float32)
    p["fc1_b"] = 0.05 * jax.random.normal(ks[13], (512,), jnp.float32)
    p["fc2_w"] = 0.05 * jax.random.normal(ks[14], (10, 512), jnp.float32)
    p["fc2_b"] = 0.05 * jax.random.normal(ks[15], (10,), jnp.float32)
    return p


# ---------------------------------------------------------------------------
# Forward pass
# ---------------------------------------------------------------------------
def cnn_forward(x, ip):
    """x: (N, 1, 28, 28) float32 NCHW.  ip: prepare_inference_params(...) output.
    Returns logits (N, 10) float32, matching eval-mode PyTorch CNN.forward."""
    n, cin, h, w = x.shape
    x = x.reshape(n, h, w).astype(jnp.bfloat16)          # Cin == 1, bf16 for the MXU

    # layer1: conv5 + BN + ReLU + pool, fused (output is the pooled NHWC map)
    q1, ph1, pw1 = _pool_quadrant_patches_nhw(x, 5)      # 4 x (N*144, 25)
    y1 = conv_bn_relu_pool(q1, ip["w1"], ip["shift1"])   # (N*144, 16) bf16
    y1 = y1.reshape(n, ph1, pw1, 16)                     # (N, 12, 12, 16) NHWC

    # layer2: conv3 + BN + ReLU + pool, fused
    q2, ph2, pw2 = _pool_quadrant_patches_nhwc(y1, 3)    # 4 x (N*25, 144)
    y2 = conv_bn_relu_pool(q2, ip["w2"], ip["shift2"])   # (N*25, 32) bf16

    # fc1 + ReLU + fc2, fused (fc1 weight rows pre-permuted to NHWC flatten order)
    flat = y2.reshape(n, ph2 * pw2 * 32)                 # (N, 800)
    return fc_fused(flat, ip["w_fc1"], ip["b_fc1"], ip["w_fc2"], ip["b_fc2"])


# ---------------------------------------------------------------------------
# Pure-JAX reference (PyTorch semantics) for a sanity check
# ---------------------------------------------------------------------------
def cnn_reference(x, p, eps=1e-5):
    def block(x, w, b, gamma, beta, mean, var):
        y = jax.lax.conv_general_dilated(
            x, w, (1, 1), "VALID", dimension_numbers=("NCHW", "OIHW", "NCHW"))
        s = gamma / jnp.sqrt(var + eps)
        y = (y + b[None, :, None, None]) * s[None, :, None, None] \
            + (beta - mean * s)[None, :, None, None]
        y = jnp.maximum(y, 0.0)
        n, c, hh, ww = y.shape
        return y.reshape(n, c, hh // 2, 2, ww // 2, 2).max(axis=(3, 5))

    y = block(x, p["conv1_w"], p["conv1_b"], p["bn1_gamma"], p["bn1_beta"],
              p["bn1_mean"], p["bn1_var"])
    y = block(y, p["conv2_w"], p["conv2_b"], p["bn2_gamma"], p["bn2_beta"],
              p["bn2_mean"], p["bn2_var"])
    flat = y.reshape(y.shape[0], -1)
    h = jnp.maximum(flat @ p["fc1_w"].T + p["fc1_b"], 0.0)
    return h @ p["fc2_w"].T + p["fc2_b"]


if __name__ == "__main__":
    key = jax.random.PRNGKey(0)
    k_x, k_p = jax.random.split(key)

    batch = 2
    x = jax.random.normal(k_x, (batch, 1, 28, 28), jnp.float32)
    params = init_params(k_p)
    ip = prepare_inference_params(params)        # one-time host-side fold / re-order

    logits = jax.block_until_ready(jax.jit(cnn_forward)(x, ip))

    assert logits.shape == (batch, 10), logits.shape
    assert bool(jnp.all(jnp.isfinite(logits)))

    ref = jax.block_until_ready(jax.jit(cnn_reference)(x, params))
    max_err = float(jnp.max(jnp.abs(logits - ref)))
    assert max_err < 0.5, f"max |kernel - ref| = {max_err}"   # loose: bf16 MXU path

    print("KERNEL_OK")
</pallas_src>

<mosaic_0001>
module attributes {stable_mosaic.version = 11 : i64} {
  func.func @conv_bn_relu_pool_kernel(%arg0: i32, %arg1: memref<256x25xbf16, #tpu.memory_space<vmem>>, %arg2: memref<256x25xbf16, #tpu.memory_space<vmem>>, %arg3: memref<256x25xbf16, #tpu.memory_space<vmem>>, %arg4: memref<256x25xbf16, #tpu.memory_space<vmem>>, %arg5: memref<25x16xbf16, #tpu.memory_space<vmem>>, %arg6: memref<1x16xf32, #tpu.memory_space<vmem>>, %arg7: memref<256x16xbf16, #tpu.memory_space<vmem>>) attributes {dimension_semantics = [#tpu.dimension_semantics<parallel>], iteration_bounds = array<i64: 2>, scalar_prefetch = 0 : i64, scratch_operands = 0 : i64, tpu.core_type = #tpu.core_type<tc>, window_params = [{transform_indices = @transform_0, window_bounds = array<i64: 256, 25>}, {transform_indices = @transform_1, window_bounds = array<i64: 256, 25>}, {transform_indices = @transform_2, window_bounds = array<i64: 256, 25>}, {transform_indices = @transform_3, window_bounds = array<i64: 256, 25>}, {pipeline_mode = #tpu.pipeline_mode<synchronous>, transform_indices = @transform_4, window_bounds = array<i64: 25, 16>}, {pipeline_mode = #tpu.pipeline_mode<synchronous>, transform_indices = @transform_5, window_bounds = array<i64: 1, 16>}, {transform_indices = @transform_6, window_bounds = array<i64: 256, 16>}]} {
    %c0 = arith.constant 0 : index
    %c0_0 = arith.constant 0 : index
    %0 = vector.load %arg5[%c0, %c0_0] : memref<25x16xbf16, #tpu.memory_space<vmem>>, vector<25x16xbf16>
    %c0_1 = arith.constant 0 : index
    %c0_2 = arith.constant 0 : index
    %1 = vector.load %arg1[%c0_1, %c0_2] : memref<256x25xbf16, #tpu.memory_space<vmem>>, vector<256x25xbf16>
    %cst = arith.constant dense<0.000000e+00> : vector<256x16xf32>
    %2 = tpu.matmul %1, %0, %cst {dimension_numbers = #tpu.dot_dimension_numbers<[1], [0], [0], [1], [0, 0, 1, 1], [], []>} : vector<256x25xbf16>, vector<25x16xbf16>, vector<256x16xf32> -> vector<256x16xf32>
    %c0_3 = arith.constant 0 : index
    %c0_4 = arith.constant 0 : index
    %3 = vector.load %arg2[%c0_3, %c0_4] : memref<256x25xbf16, #tpu.memory_space<vmem>>, vector<256x25xbf16>
    %cst_5 = arith.constant dense<0.000000e+00> : vector<256x16xf32>
    %4 = tpu.matmul %3, %0, %cst_5 {dimension_numbers = #tpu.dot_dimension_numbers<[1], [0], [0], [1], [0, 0, 1, 1], [], []>} : vector<256x25xbf16>, vector<25x16xbf16>, vector<256x16xf32> -> vector<256x16xf32>
    %c0_6 = arith.constant 0 : index
    %c0_7 = arith.constant 0 : index
    %5 = vector.load %arg3[%c0_6, %c0_7] : memref<256x25xbf16, #tpu.memory_space<vmem>>, vector<256x25xbf16>
    %cst_8 = arith.constant dense<0.000000e+00> : vector<256x16xf32>
    %6 = tpu.matmul %5, %0, %cst_8 {dimension_numbers = #tpu.dot_dimension_numbers<[1], [0], [0], [1], [0, 0, 1, 1], [], []>} : vector<256x25xbf16>, vector<25x16xbf16>, vector<256x16xf32> -> vector<256x16xf32>
    %c0_9 = arith.constant 0 : index
    %c0_10 = arith.constant 0 : index
    %7 = vector.load %arg4[%c0_9, %c0_10] : memref<256x25xbf16, #tpu.memory_space<vmem>>, vector<256x25xbf16>
    %cst_11 = arith.constant dense<0.000000e+00> : vector<256x16xf32>
    %8 = tpu.matmul %7, %0, %cst_11 {dimension_numbers = #tpu.dot_dimension_numbers<[1], [0], [0], [1], [0, 0, 1, 1], [], []>} : vector<256x25xbf16>, vector<25x16xbf16>, vector<256x16xf32> -> vector<256x16xf32>
    %9 = arith.maximumf %2, %4 : vector<256x16xf32>
    %10 = arith.maximumf %6, %8 : vector<256x16xf32>
    %11 = arith.maximumf %9, %10 : vector<256x16xf32>
    %c0_12 = arith.constant 0 : index
    %c0_13 = arith.constant 0 : index
    %12 = vector.load %arg6[%c0_12, %c0_13] : memref<1x16xf32, #tpu.memory_space<vmem>>, vector<1x16xf32>
    %13 = vector.broadcast %12 : vector<1x16xf32> to vector<256x16xf32>
    %14 = arith.addf %11, %13 : vector<256x16xf32>
    %cst_14 = arith.constant 0.000000e+00 : f32
    %15 = vector.broadcast %cst_14 : f32 to vector<256x16xf32>
    %16 = arith.maximumf %14, %15 : vector<256x16xf32>
    %17 = arith.truncf %16 : vector<256x16xf32> to vector<256x16xbf16>
    %c0_15 = arith.constant 0 : index
    %c0_16 = arith.constant 0 : index
    %18 = vector.load %arg7[%c0_15, %c0_16] : memref<256x16xbf16, #tpu.memory_space<vmem>>, vector<256x16xbf16>
    tpu.vector_store %arg7[%c0_15, %c0_16], %17 {strides = array<i32>} : memref<256x16xbf16, #tpu.memory_space<vmem>>, vector<256x16xbf16>,
    return
  }
  func.func @transform_0(%arg0: i32) -> (i32, i32) {
    %c0_i32 = arith.constant 0 : i32
    %c0_i32_0 = arith.constant 0 : i32
    return %arg0, %c0_i32 : i32, i32
  }
  func.func @transform_1(%arg0: i32) -> (i32, i32) {
    %c0_i32 = arith.constant 0 : i32
    %c0_i32_0 = arith.constant 0 : i32
    return %arg0, %c0_i32 : i32, i32
  }
  func.func @transform_2(%arg0: i32) -> (i32, i32) {
    %c0_i32 = arith.constant 0 : i32
    %c0_i32_0 = arith.constant 0 : i32
    return %arg0, %c0_i32 : i32, i32
  }
  func.func @transform_3(%arg0: i32) -> (i32, i32) {
    %c0_i32 = arith.constant 0 : i32
    %c0_i32_0 = arith.constant 0 : i32
    return %arg0, %c0_i32 : i32, i32
  }
  func.func @transform_4(%arg0: i32) -> (i32, i32) {
    %c0_i32 = arith.constant 0 : i32
    %c0_i32_0 = arith.constant 0 : i32
    %c0_i32_1 = arith.constant 0 : i32
    return %c0_i32, %c0_i32_0 : i32, i32
  }
  func.func @transform_5(%arg0: i32) -> (i32, i32) {
    %c0_i32 = arith.constant 0 : i32
    %c0_i32_0 = arith.constant 0 : i32
    %c0_i32_1 = arith.constant 0 : i32
    return %c0_i32, %c0_i32_0 : i32, i32
  }
  func.func @transform_6(%arg0: i32) -> (i32, i32) {
    %c0_i32 = arith.constant 0 : i32
    %c0_i32_0 = arith.constant 0 : i32
    return %arg0, %c0_i32 : i32, i32
  }
}

module attributes {stable_mosaic.version = 11 : i64} {
  func.func @fc_fused_kernel(%arg0: i32, %arg1: memref<16x800xbf16, #tpu.memory_space<vmem>>, %arg2: memref<800x512xbf16, #tpu.memory_space<vmem>>, %arg3: memref<1x512xf32, #tpu.memory_space<vmem>>, %arg4: memref<512x10xbf16, #tpu.memory_space<vmem>>, %arg5: memref<1x10xf32, #tpu.memory_space<vmem>>, %arg6: memref<16x10xf32, #tpu.memory_space<vmem>>) attributes {dimension_semantics = [#tpu.dimension_semantics<parallel>], iteration_bounds = array<i64: 1>, scalar_prefetch = 0 : i64, scratch_operands = 0 : i64, tpu.core_type = #tpu.core_type<tc>, window_params = [{transform_indices = @transform_0, window_bounds = array<i64: 16, 800>}, {pipeline_mode = #tpu.pipeline_mode<synchronous>, transform_indices = @transform_1, window_bounds = array<i64: 800, 512>}, {pipeline_mode = #tpu.pipeline_mode<synchronous>, transform_indices = @transform_2, window_bounds = array<i64: 1, 512>}, {pipeline_mode = #tpu.pipeline_mode<synchronous>, transform_indices = @transform_3, window_bounds = array<i64: 512, 10>}, {pipeline_mode = #tpu.pipeline_mode<synchronous>, transform_indices = @transform_4, window_bounds = array<i64: 1, 10>}, {transform_indices = @transform_5, window_bounds = array<i64: 16, 10>}]} {
    %c0 = arith.constant 0 : index
    %c0_0 = arith.constant 0 : index
    %0 = vector.load %arg1[%c0, %c0_0] : memref<16x800xbf16, #tpu.memory_space<vmem>>, vector<16x800xbf16>
    %c0_1 = arith.constant 0 : index
    %c0_2 = arith.constant 0 : index
    %1 = vector.load %arg2[%c0_1, %c0_2] : memref<800x512xbf16, #tpu.memory_space<vmem>>, vector<800x512xbf16>
    %cst = arith.constant dense<0.000000e+00> : vector<16x512xf32>
    %2 = tpu.matmul %0, %1, %cst {dimension_numbers = #tpu.dot_dimension_numbers<[1], [0], [0], [1], [0, 0, 1, 1], [], []>} : vector<16x800xbf16>, vector<800x512xbf16>, vector<16x512xf32> -> vector<16x512xf32>
    %c0_3 = arith.constant 0 : index
    %c0_4 = arith.constant 0 : index
    %3 = vector.load %arg3[%c0_3, %c0_4] : memref<1x512xf32, #tpu.memory_space<vmem>>, vector<1x512xf32>
    %4 = vector.broadcast %3 : vector<1x512xf32> to vector<16x512xf32>
    %5 = arith.addf %2, %4 : vector<16x512xf32>
    %cst_5 = arith.constant 0.000000e+00 : f32
    %6 = vector.broadcast %cst_5 : f32 to vector<16x512xf32>
    %7 = arith.maximumf %5, %6 : vector<16x512xf32>
    %8 = arith.truncf %7 : vector<16x512xf32> to vector<16x512xbf16>
    %c0_6 = arith.constant 0 : index
    %c0_7 = arith.constant 0 : index
    %9 = vector.load %arg4[%c0_6, %c0_7] : memref<512x10xbf16, #tpu.memory_space<vmem>>, vector<512x10xbf16>
    %cst_8 = arith.constant dense<0.000000e+00> : vector<16x10xf32>
    %10 = tpu.matmul %8, %9, %cst_8 {dimension_numbers = #tpu.dot_dimension_numbers<[1], [0], [0], [1], [0, 0, 1, 1], [], []>} : vector<16x512xbf16>, vector<512x10xbf16>, vector<16x10xf32> -> vector<16x10xf32>
    %c0_9 = arith.constant 0 : index
    %c0_10 = arith.constant 0 : index
    %11 = vector.load %arg5[%c0_9, %c0_10] : memref<1x10xf32, #tpu.memory_space<vmem>>, vector<1x10xf32>
    %12 = vector.broadcast %11 : vector<1x10xf32> to vector<16x10xf32>
    %13 = arith.addf %10, %12 : vector<16x10xf32>
    %c0_11 = arith.constant 0 : index
    %c0_12 = arith.constant 0 : index
    %14 = vector.load %arg6[%c0_11, %c0_12] : memref<16x10xf32, #tpu.memory_space<vmem>>, vector<16x10xf32>
    tpu.vector_store %arg6[%c0_11, %c0_12], %13 {strides = array<i32>} : memref<16x10xf32, #tpu.memory_space<vmem>>, vector<16x10xf32>,
    return
  }
  func.func @transform_0(%arg0: i32) -> (i32, i32) {
    %c0_i32 = arith.constant 0 : i32
    %c0_i32_0 = arith.constant 0 : i32
    return %arg0, %c0_i32 : i32, i32
  }
  func.func @transform_1(%arg0: i32) -> (i32, i32) {
    %c0_i32 = arith.constant 0 : i32
    %c0_i32_0 = arith.constant 0 : i32
    %c0_i32_1 = arith.constant 0 : i32
    return %c0_i32, %c0_i32_0 : i32, i32
  }
  func.func @transform_2(%arg0: i32) -> (i32, i32) {
    %c0_i32 = arith.constant 0 : i32
    %c0_i32_0 = arith.constant 0 : i32
    %c0_i32_1 = arith.constant 0 : i32
    return %c0_i32, %c0_i32_0 : i32, i32
  }
  func.func @transform_3(%arg0: i32) -> (i32, i32) {
    %c0_i32 = arith.constant 0 : i32
    %c0_i32_0 = arith.constant 0 : i32
    %c0_i32_1 = arith.constant 0 : i32
    return %c0_i32, %c0_i32_0 : i32, i32
  }
  func.func @transform_4(%arg0: i32) -> (i32, i32) {
    %c0_i32 = arith.constant 0 : i32
    %c0_i32_0 = arith.constant 0 : i32
    %c0_i32_1 = arith.constant 0 : i32
    return %c0_i32, %c0_i32_0 : i32, i32
  }
  func.func @transform_5(%arg0: i32) -> (i32, i32) {
    %c0_i32 = arith.constant 0 : i32
    %c0_i32_0 = arith.constant 0 : i32
    return %arg0, %c0_i32 : i32, i32
  }
}

module attributes {stable_mosaic.version = 11 : i64} {
  func.func @conv_bn_relu_pool_kernel(%arg0: i32, %arg1: memref<64x144xbf16, #tpu.memory_space<vmem>>, %arg2: memref<64x144xbf16, #tpu.memory_space<vmem>>, %arg3: memref<64x144xbf16, #tpu.memory_space<vmem>>, %arg4: memref<64x144xbf16, #tpu.memory_space<vmem>>, %arg5: memref<144x32xbf16, #tpu.memory_space<vmem>>, %arg6: memref<1x32xf32, #tpu.memory_space<vmem>>, %arg7: memref<64x32xbf16, #tpu.memory_space<vmem>>) attributes {dimension_semantics = [#tpu.dimension_semantics<parallel>], iteration_bounds = array<i64: 1>, scalar_prefetch = 0 : i64, scratch_operands = 0 : i64, tpu.core_type = #tpu.core_type<tc>, window_params = [{transform_indices = @transform_0, window_bounds = array<i64: 64, 144>}, {transform_indices = @transform_1, window_bounds = array<i64: 64, 144>}, {transform_indices = @transform_2, window_bounds = array<i64: 64, 144>}, {transform_indices = @transform_3, window_bounds = array<i64: 64, 144>}, {pipeline_mode = #tpu.pipeline_mode<synchronous>, transform_indices = @transform_4, window_bounds = array<i64: 144, 32>}, {pipeline_mode = #tpu.pipeline_mode<synchronous>, transform_indices = @transform_5, window_bounds = array<i64: 1, 32>}, {transform_indices = @transform_6, window_bounds = array<i64: 64, 32>}]} {
    %c0 = arith.constant 0 : index
    %c0_0 = arith.constant 0 : index
    %0 = vector.load %arg5[%c0, %c0_0] : memref<144x32xbf16, #tpu.memory_space<vmem>>, vector<144x32xbf16>
    %c0_1 = arith.constant 0 : index
    %c0_2 = arith.constant 0 : index
    %1 = vector.load %arg1[%c0_1, %c0_2] : memref<64x144xbf16, #tpu.memory_space<vmem>>, vector<64x144xbf16>
    %cst = arith.constant dense<0.000000e+00> : vector<64x32xf32>
    %2 = tpu.matmul %1, %0, %cst {dimension_numbers = #tpu.dot_dimension_numbers<[1], [0], [0], [1], [0, 0, 1, 1], [], []>} : vector<64x144xbf16>, vector<144x32xbf16>, vector<64x32xf32> -> vector<64x32xf32>
    %c0_3 = arith.constant 0 : index
    %c0_4 = arith.constant 0 : index
    %3 = vector.load %arg2[%c0_3, %c0_4] : memref<64x144xbf16, #tpu.memory_space<vmem>>, vector<64x144xbf16>
    %cst_5 = arith.constant dense<0.000000e+00> : vector<64x32xf32>
    %4 = tpu.matmul %3, %0, %cst_5 {dimension_numbers = #tpu.dot_dimension_numbers<[1], [0], [0], [1], [0, 0, 1, 1], [], []>} : vector<64x144xbf16>, vector<144x32xbf16>, vector<64x32xf32> -> vector<64x32xf32>
    %c0_6 = arith.constant 0 : index
    %c0_7 = arith.constant 0 : index
    %5 = vector.load %arg3[%c0_6, %c0_7] : memref<64x144xbf16, #tpu.memory_space<vmem>>, vector<64x144xbf16>
    %cst_8 = arith.constant dense<0.000000e+00> : vector<64x32xf32>
    %6 = tpu.matmul %5, %0, %cst_8 {dimension_numbers = #tpu.dot_dimension_numbers<[1], [0], [0], [1], [0, 0, 1, 1], [], []>} : vector<64x144xbf16>, vector<144x32xbf16>, vector<64x32xf32> -> vector<64x32xf32>
    %c0_9 = arith.constant 0 : index
    %c0_10 = arith.constant 0 : index
    %7 = vector.load %arg4[%c0_9, %c0_10] : memref<64x144xbf16, #tpu.memory_space<vmem>>, vector<64x144xbf16>
    %cst_11 = arith.constant dense<0.000000e+00> : vector<64x32xf32>
    %8 = tpu.matmul %7, %0, %cst_11 {dimension_numbers = #tpu.dot_dimension_numbers<[1], [0], [0], [1], [0, 0, 1, 1], [], []>} : vector<64x144xbf16>, vector<144x32xbf16>, vector<64x32xf32> -> vector<64x32xf32>
    %9 = arith.maximumf %2, %4 : vector<64x32xf32>
    %10 = arith.maximumf %6, %8 : vector<64x32xf32>
    %11 = arith.maximumf %9, %10 : vector<64x32xf32>
    %c0_12 = arith.constant 0 : index
    %c0_13 = arith.constant 0 : index
    %12 = vector.load %arg6[%c0_12, %c0_13] : memref<1x32xf32, #tpu.memory_space<vmem>>, vector<1x32xf32>
    %13 = vector.broadcast %12 : vector<1x32xf32> to vector<64x32xf32>
    %14 = arith.addf %11, %13 : vector<64x32xf32>
    %cst_14 = arith.constant 0.000000e+00 : f32
    %15 = vector.broadcast %cst_14 : f32 to vector<64x32xf32>
    %16 = arith.maximumf %14, %15 : vector<64x32xf32>
    %17 = arith.truncf %16 : vector<64x32xf32> to vector<64x32xbf16>
    %c0_15 = arith.constant 0 : index
    %c0_16 = arith.constant 0 : index
    %18 = vector.load %arg7[%c0_15, %c0_16] : memref<64x32xbf16, #tpu.memory_space<vmem>>, vector<64x32xbf16>
    tpu.vector_store %arg7[%c0_15, %c0_16], %17 {strides = array<i32>} : memref<64x32xbf16, #tpu.memory_space<vmem>>, vector<64x32xbf16>,
    return
  }
  func.func @transform_0(%arg0: i32) -> (i32, i32) {
    %c0_i32 = arith.constant 0 : i32
    %c0_i32_0 = arith.constant 0 : i32
    return %arg0, %c0_i32 : i32, i32
  }
  func.func @transform_1(%arg0: i32) -> (i32, i32) {
    %c0_i32 = arith.constant 0 : i32
    %c0_i32_0 = arith.constant 0 : i32
    return %arg0, %c0_i32 : i32, i32
  }
  func.func @transform_2(%arg0: i32) -> (i32, i32) {
    %c0_i32 = arith.constant 0 : i32
    %c0_i32_0 = arith.constant 0 : i32
    return %arg0, %c0_i32 : i32, i32
  }
  func.func @transform_3(%arg0: i32) -> (i32, i32) {
    %c0_i32 = arith.constant 0 : i32
    %c0_i32_0 = arith.constant 0 : i32
    return %arg0, %c0_i32 : i32, i32
  }
  func.func @transform_4(%arg0: i32) -> (i32, i32) {
    %c0_i32 = arith.constant 0 : i32
    %c0_i32_0 = arith.constant 0 : i32
    %c0_i32_1 = arith.constant 0 : i32
    return %c0_i32, %c0_i32_0 : i32, i32
  }
  func.func @transform_5(%arg0: i32) -> (i32, i32) {
    %c0_i32 = arith.constant 0 : i32
    %c0_i32_0 = arith.constant 0 : i32
    %c0_i32_1 = arith.constant 0 : i32
    return %c0_i32, %c0_i32_0 : i32, i32
  }
  func.func @transform_6(%arg0: i32) -> (i32, i32) {
    %c0_i32 = arith.constant 0 : i32
    %c0_i32_0 = arith.constant 0 : i32
    return %arg0, %c0_i32 : i32, i32
  }
}

</mosaic_0001>

<bundles_post_ra>
// kernel: cnn_forward.3
= control target key start
LH: loop header
LB: loop body
LE: loop exit
PB: predicated region body
PF: predicated region fallthrough
CT: control target
= control target key end

     0   :  { %s2596_s21 = smov 0   ;;  %s3162_s0 = inlined_call_operand.vmem [shape: bf16[512,25], index: 0, kind: input, shape index: {}]   ;;  %s3163_s1 = inlined_call_operand.vmem [shape: bf16[512,25], index: 1, kind: input, shape index: {}]   ;;  %s3164_s2 = inlined_call_operand.vmem [shape: bf16[512,25], index: 2, kind: input, shape index: {}]   ;;  %s3165_s3 = inlined_call_operand.vmem [shape: bf16[512,25], index: 3, kind: input, shape index: {}]   ;;  %s3166_s4 = inlined_call_operand.vmem [shape: bf16[25,16], index: 4, kind: input, shape index: {}]   ;;  %s3167_s5 = inlined_call_operand.vmem [shape: f32[1,16], index: 5, kind: input, shape index: {}]   ;;  %s3168_s6 = inlined_call_operand.vmem [shape: bf16[512,16], index: 6, kind: output, shape index: {}]  }
   0x1 LB: > { %s2049_s22 = sadd.s32 4294967295, %s2558_s21   ;;  %p2053_p0 = scmp.ge.s32.totalorder %s2558_s21, 1  ;;  %s2558_s21 = sphi %s2596_s21, %s16_s21  }
   0x2   : > { %p246_p1 = scmp.lt.s32.totalorder %s2558_s21, 3 }
   0x4   : > { %p247_p2 = pnand %p2053_p0, %p246_p1 }
   0x6   : > { %250 = sbr.rel (%p247_p2) target bundleno = 369 (0x171), region = 44 }
   0xd   : > { %v2486_v0 = vld [vmem:[%s3166_s4] sm:$0xff]   ;;  %vm498_vm0 = vcmask 1043456   ;;  %v2487_v1 = vld [vmem:[%s3166_s4 + $0x8] sm:$0x1f]   ;;  %vm499_vm1 = vcmask 1044480   ;;  %s2054_s27 = sshll.u32 %s2049_s22, 5 }
   0xe   : > { %2333 = vmatprep.subr.bf16.mxu0 %v2486_v0  ;;  %2369 = vmatprep.subr.bf16.mxu1 %v2486_v0  ;;  %v2560_v2 = vmov 65535   ;;  %p292_p3 = scmp.lt.s32.totalorder %s2054_s27, 63  ;;  %vm449_vm2 = vcmask 203776   ;;  %vm1924_vm3 = vcmask 125952  }
   0xf   : > { %2334 = vmatpush3.bf16.msra.mxu0 %v2486_v0  ;;  %2370 = vmatpush3.bf16.msra.mxu1 %v2486_v0  ;;  %v500_v3 = vsel %vm498_vm0, 4294967295, %v2560_v2 }
  0x10   : > { %v501_v4 = vsel %vm499_vm1, %v500_v3, 0  ;;  %s3256_s27 = smov (!%p292_p3, %s2054_s27), 63 }
  0x11   : > { %v503_v5 = vand.u32 %v2487_v1, %v501_v4  ;;  %s2610_s28 = sshll.u32 %s3256_s27, 2 }
  0x12   : > { %s2616_s7 = scalar_lea.vmem %s3162_s0, %s2610_s28  ;;  %s2622_s10 = scalar_lea.vmem %s3163_s1, %s2610_s28 }
  0x13   : > { %2335 = vmatprep.subr.bf16.mxu0 %v503_v5  ;;  %2371 = vmatprep.subr.bf16.mxu1 %v503_v5  ;;  %v2488_v6 = vld [vmem:[%s2616_s7] sm:$0xff]   ;;  %v2490_v8 = vld [vmem:[%s2616_s7 + $0x8] sm:$0xff]   ;;  %v2492_v10 = vld [vmem:[%s2616_s7 + $0x10] sm:$0xff]   ;;  %s2665_s13 = scalar_lea.vmem %s3164_s2, %s2610_s28  ;;  %s2672_s16 = scalar_lea.vmem %s3165_s3, %s2610_s28 }
  0x14   : > { %2336 = vmatpush3.bf16.msra.mxu0 %v503_v5  ;;  %2372 = vmatpush3.bf16.msra.mxu1 %v503_v5  ;;  %v2489_v7 = vld [vmem:[%s2622_s10] sm:$0xff]   ;;  %v2491_v9 = vld [vmem:[%s2622_s10 + $0x8] sm:$0xff]   ;;  %v2493_v11 = vld [vmem:[%s2622_s10 + $0x10] sm:$0xff]   ;;  %s2980_s22 = scalar_lea.vmem %s3168_s6, %s2610_s28 }
  0x15   : > { %2405 = vmatprep.subr.bf16.mxu0 %v2486_v0  ;;  %2441 = vmatprep.subr.bf16.mxu1 %v2486_v0  ;;  %v2494_v12 = vld [vmem:[%s2616_s7 + $0x18] sm:$0xff]   ;;  %v2496_v14 = vld [vmem:[%s2616_s7 + $0x20] sm:$0xff]   ;;  %v2498_v16 = vld [vmem:[%s2616_s7 + $0x28] sm:$0xff]  }
  0x16   : > { %2337 = vmatprep.mubr.msk.bf16.mxu0 %vm449_vm2, %v2488_v6  ;;  %2373 = vmatprep.mubr.msk.bf16.mxu1 %vm449_vm2, %v2489_v7  ;;  %v2495_v13 = vld [vmem:[%s2622_s10 + $0x18] sm:$0xff]   ;;  %v2497_v15 = vld [vmem:[%s2622_s10 + $0x20] sm:$0xff]   ;;  %v2499_v17 = vld [vmem:[%s2622_s10 + $0x28] sm:$0xff]  }
  0x17   : > { %2338 = vmatmul.mubr.msk.bf16.vlgmr.msra.gmra.mrb[0].mxu0 %vm449_vm2, %v2490_v8  ;;  %2374 = vmatmul.mubr.msk.bf16.vlgmr.msra.gmra.mrb[0].mxu1 %vm449_vm2, %v2491_v9  ;;  %v2500_v18 = vld [vmem:[%s2616_s7 + $0x30] sm:$0xff]   ;;  %v2502_v20 = vld [vmem:[%s2616_s7 + $0x38] sm:$0xff]   ;;  %v2504_v22 = vld [vmem:[%s2616_s7 + $0x40] sm:$0xff]  }
  0x18   : > { %2406 = vmatpush3.bf16.msra.mxu0 %v2486_v0  ;;  %2442 = vmatpush3.bf16.msra.mxu1 %v2486_v0  ;;  %v2501_v19 = vld [vmem:[%s2622_s10 + $0x30] sm:$0xff]   ;;  %v2503_v21 = vld [vmem:[%s2622_s10 + $0x38] sm:$0xff]   ;;  %v2505_v23 = vld [vmem:[%s2622_s10 + $0x40] sm:$0xff]  }
  0x19   : > { %2341 = vmatprep.mubr.msk.bf16.mxu0 %vm449_vm2, %v2492_v10  ;;  %2377 = vmatprep.mubr.msk.bf16.mxu1 %vm449_vm2, %v2493_v11  ;;  %v2506_v24 = vld [vmem:[%s2616_s7 + $0x48] sm:$0xff]   ;;  %v2508_v26 = vld [vmem:[%s2616_s7 + $0x50] sm:$0xff]   ;;  %v2510_v28 = vld [vmem:[%s2616_s7 + $0x58] sm:$0xff]  }
  0x1a   : > { %2407 = vmatprep.subr.bf16.mxu0 %v503_v5  ;;  %2443 = vmatprep.subr.bf16.mxu1 %v503_v5  ;;  %v2507_v25 = vld [vmem:[%s2622_s10 + $0x48] sm:$0xff]   ;;  %v2509_v27 = vld [vmem:[%s2622_s10 + $0x50] sm:$0xff]   ;;  %v2511_v29 = vld [vmem:[%s2622_s10 + $0x58] sm:$0xff]  }
  0x1b   : > { %v2512_v30 = vld [vmem:[%s2616_s7 + $0x60] sm:$0xff]   ;;  %v2514_v32 = vld [vmem:[%s2616_s7 + $0x68] sm:$0xff]   ;;  %v2516_v34 = vld [vmem:[%s2616_s7 + $0x70] sm:$0xff]  }
  0x1c   : > { %2408 = vmatpush3.bf16.msra.mxu0 %v503_v5  ;;  %2444 = vmatpush3.bf16.msra.mxu1 %v503_v5  ;;  %v2513_v31 = vld [vmem:[%s2622_s10 + $0x60] sm:$0xff]   ;;  %v2515_v33 = vld [vmem:[%s2622_s10 + $0x68] sm:$0xff]   ;;  %v2517_v35 = vld [vmem:[%s2622_s10 + $0x70] sm:$0xff]  }
  0x1d   : > { %v2518_v36 = vld [vmem:[%s2616_s7 + $0x78] sm:$0xff]   ;;  %v2520_v38 = vld [vmem:[%s2665_s13] sm:$0xff]   ;;  %v2522_v40 = vld [vmem:[%s2665_s13 + $0x8] sm:$0xff]  }
  0x1e   : > { %v2519_v37 = vld [vmem:[%s2622_s10 + $0x78] sm:$0xff]   ;;  %v2521_v39 = vld [vmem:[%s2672_s16] sm:$0xff]   ;;  %v2523_v41 = vld [vmem:[%s2672_s16 + $0x8] sm:$0xff]  }
  0x1f   : > { %2342 = vmatmul.mubr.msk.bf16.gmra.mrb[4].mxu0 %vm449_vm2, %v2494_v12  ;;  %2378 = vmatmul.mubr.msk.bf16.gmra.mrb[4].mxu1 %vm449_vm2, %v2495_v13  ;;  %v2524_v42 = vld [vmem:[%s2665_s13 + $0x10] sm:$0xff]   ;;  %v2526_v44 = vld [vmem:[%s2665_s13 + $0x18] sm:$0xff]   ;;  %v2528_v46 = vld [vmem:[%s2665_s13 + $0x20] sm:$0xff]  }
  0x20   : > { %2345 = vmatprep.mubr.msk.bf16.mxu0 %vm449_vm2, %v2496_v14  ;;  %2381 = vmatprep.mubr.msk.bf16.mxu1 %vm449_vm2, %v2497_v15  ;;  %v2525_v43 = vld [vmem:[%s2672_s16 + $0x10] sm:$0xff]   ;;  %v2527_v45 = vld [vmem:[%s2672_s16 + $0x18] sm:$0xff]   ;;  %v2529_v47 = vld [vmem:[%s2672_s16 + $0x20] sm:$0xff]  }
  0x21   : > { %v2530_v48 = vld [vmem:[%s2665_s13 + $0x28] sm:$0xff]   ;;  %v2532_v50 = vld [vmem:[%s2665_s13 + $0x30] sm:$0xff]   ;;  %v2534_v52 = vld [vmem:[%s2665_s13 + $0x38] sm:$0xff]  }
  0x22   : > { %v2531_v49 = vld [vmem:[%s2672_s16 + $0x28] sm:$0xff]   ;;  %v2533_v51 = vld [vmem:[%s2672_s16 + $0x30] sm:$0xff]   ;;  %v2535_v53 = vld [vmem:[%s2672_s16 + $0x38] sm:$0xff]  }
  0x23   : > { %v2536_v54 = vld [vmem:[%s2665_s13 + $0x40] sm:$0xff]   ;;  %v2538_v56 = vld [vmem:[%s2665_s13 + $0x48] sm:$0xff]   ;;  %v2540_v58 = vld [vmem:[%s2665_s13 + $0x50] sm:$0xff]  }
  0x24   : > { %v2537_v55 = vld [vmem:[%s2672_s16 + $0x40] sm:$0xff]   ;;  %v2539_v57 = vld [vmem:[%s2672_s16 + $0x48] sm:$0xff]   ;;  %v2541_v59 = vld [vmem:[%s2672_s16 + $0x50] sm:$0xff]  }
  0x25   : > { %v2542_v60 = vld [vmem:[%s2665_s13 + $0x58] sm:$0xff]   ;;  %v2544_v62 = vld [vmem:[%s2665_s13 + $0x60] sm:$0xff]   ;;  %v2546_v0 = vld [vmem:[%s2665_s13 + $0x68] sm:$0xff]  }
  0x26   : > { %v2543_v61 = vld [vmem:[%s2672_s16 + $0x58] sm:$0xff]   ;;  %v2545_v63 = vld [vmem:[%s2672_s16 + $0x60] sm:$0xff]   ;;  %v2547_v1 = vld [vmem:[%s2672_s16 + $0x68] sm:$0xff]  }
  0x27   : > { %2346 = vmatmul.mubr.msk.bf16.gmra.mrb[8].mxu0 %vm449_vm2, %v2498_v16  ;;  %2382 = vmatmul.mubr.msk.bf16.gmra.mrb[8].mxu1 %vm449_vm2, %v2499_v17  ;;  %v2548_v2 = vld [vmem:[%s2665_s13 + $0x70] sm:$0xff]   ;;  %v2550_v4 = vld [vmem:[%s2665_s13 + $0x78] sm:$0xff]  }
  0x28   : > { %2349 = vmatprep.mubr.msk.bf16.mxu0 %vm449_vm2, %v2500_v18  ;;  %2385 = vmatprep.mubr.msk.bf16.mxu1 %vm449_vm2, %v2501_v19  ;;  %v2549_v3 = vld [vmem:[%s2672_s16 + $0x70] sm:$0xff]   ;;  %v2551_v5 = vld [vmem:[%s2672_s16 + $0x78] sm:$0xff]  }
  0x2f   : > { %2350 = vmatmul.mubr.msk.bf16.gmra.mrb[12].mxu0 %vm449_vm2, %v2502_v20  ;;  %2386 = vmatmul.mubr.msk.bf16.gmra.mrb[12].mxu1 %vm449_vm2, %v2503_v21 }
  0x30   : > { %2353 = vmatprep.mubr.msk.bf16.mxu0 %vm449_vm2, %v2504_v22  ;;  %2389 = vmatprep.mubr.msk.bf16.mxu1 %vm449_vm2, %v2505_v23 }
  0x37   : > { %2354 = vmatmul.mubr.msk.bf16.gmra.mrb[16].mxu0 %vm449_vm2, %v2506_v24  ;;  %2390 = vmatmul.mubr.msk.bf16.gmra.mrb[16].mxu1 %vm449_vm2, %v2507_v25 }
  0x38   : > { %2357 = vmatprep.mubr.msk.bf16.mxu0 %vm449_vm2, %v2508_v26  ;;  %2393 = vmatprep.mubr.msk.bf16.mxu1 %vm449_vm2, %v2509_v27 }
  0x3f   : > { %2358 = vmatmul.mubr.msk.bf16.gmra.mrb[20].mxu0 %vm449_vm2, %v2510_v28  ;;  %2394 = vmatmul.mubr.msk.bf16.gmra.mrb[20].mxu1 %vm449_vm2, %v2511_v29 }
  0x40   : > { %2361 = vmatprep.mubr.msk.bf16.mxu0 %vm449_vm2, %v2512_v30  ;;  %2397 = vmatprep.mubr.msk.bf16.mxu1 %vm449_vm2, %v2513_v31 }
  0x47   : > { %2362 = vmatmul.mubr.msk.bf16.gmra.mrb[24].mxu0 %vm449_vm2, %v2514_v32  ;;  %2398 = vmatmul.mubr.msk.bf16.gmra.mrb[24].mxu1 %vm449_vm2, %v2515_v33 }
  0x48   : > { %2365 = vmatprep.mubr.msk.bf16.mxu0 %vm449_vm2, %v2516_v34  ;;  %2401 = vmatprep.mubr.msk.bf16.mxu1 %vm449_vm2, %v2517_v35 }
  0x4f   : > { %2366 = vmatmul.mubr.msk.bf16.gmra.mrb[28].mxu0 %vm449_vm2, %v2518_v36  ;;  %2402 = vmatmul.mubr.msk.bf16.gmra.mrb[28].mxu1 %vm449_vm2, %v2519_v37 }
  0x50   : > { %2409 = vmatprep.mubr.msk.bf16.mxu0 %vm449_vm2, %v2520_v38  ;;  %2445 = vmatprep.mubr.msk.bf16.mxu1 %vm449_vm2, %v2521_v39 }
  0x57   : > { %2410 = vmatmul.mubr.msk.bf16.vlgmr.msra.gmra.mrb[32].mxu0 %vm449_vm2, %v2522_v40  ;;  %2446 = vmatmul.mubr.msk.bf16.vlgmr.msra.gmra.mrb[32].mxu1 %vm449_vm2, %v2523_v41 }
  0x58   : > { %2413 = vmatprep.mubr.msk.bf16.mxu0 %vm449_vm2, %v2524_v42  ;;  %2449 = vmatprep.mubr.msk.bf16.mxu1 %vm449_vm2, %v2525_v43 }
  0x5f   : > { %2414 = vmatmul.mubr.msk.bf16.gmra.mrb[36].mxu0 %vm449_vm2, %v2526_v44  ;;  %2450 = vmatmul.mubr.msk.bf16.gmra.mrb[36].mxu1 %vm449_vm2, %v2527_v45  ;;  %v2959_v45 = vld [vmem:[%s3167_s5] ss:$0 sm:$0xff] }
  0x60   : > { %2417 = vmatprep.mubr.msk.bf16.mxu0 %vm449_vm2, %v2528_v46  ;;  %2453 = vmatprep.mubr.msk.bf16.mxu1 %vm449_vm2, %v2529_v47 }
  0x67   : > { %2418 = vmatmul.mubr.msk.bf16.gmra.mrb[40].mxu0 %vm449_vm2, %v2530_v48  ;;  %2454 = vmatmul.mubr.msk.bf16.gmra.mrb[40].mxu1 %vm449_vm2, %v2531_v49 }
  0x68   : > { %2421 = vmatprep.mubr.msk.bf16.mxu0 %vm449_vm2, %v2532_v50  ;;  %2457 = vmatprep.mubr.msk.bf16.mxu1 %vm449_vm2, %v2533_v51 }
  0x6f   : > { %2422 = vmatmul.mubr.msk.bf16.gmra.mrb[44].mxu0 %vm449_vm2, %v2534_v52  ;;  %2458 = vmatmul.mubr.msk.bf16.gmra.mrb[44].mxu1 %vm449_vm2, %v2535_v53 }
  0x70   : > { %2425 = vmatprep.mubr.msk.bf16.mxu0 %vm449_vm2, %v2536_v54  ;;  %2461 = vmatprep.mubr.msk.bf16.mxu1 %vm449_vm2, %v2537_v55 }
  0x77   : > { %2426 = vmatmul.mubr.msk.bf16.gmra.mrb[48].mxu0 %vm449_vm2, %v2538_v56  ;;  %2462 = vmatmul.mubr.msk.bf16.gmra.mrb[48].mxu1 %vm449_vm2, %v2539_v57 }
  0x78   : > { %2429 = vmatprep.mubr.msk.bf16.mxu0 %vm449_vm2, %v2540_v58  ;;  %2465 = vmatprep.mubr.msk.bf16.mxu1 %vm449_vm2, %v2541_v59 }
  0x7f   : > { %2430 = vmatmul.mubr.msk.bf16.gmra.mrb[52].mxu0 %vm449_vm2, %v2542_v60  ;;  %2466 = vmatmul.mubr.msk.bf16.gmra.mrb[52].mxu1 %vm449_vm2, %v2543_v61 }
  0x80   : > { %2433 = vmatprep.mubr.msk.bf16.mxu0 %vm449_vm2, %v2544_v62  ;;  %2469 = vmatprep.mubr.msk.bf16.mxu1 %vm449_vm2, %v2545_v63 }
  0x87   : > { %2434 = vmatmul.mubr.msk.bf16.gmra.mrb[56].mxu0 %vm449_vm2, %v2546_v0  ;;  %2470 = vmatmul.mubr.msk.bf16.gmra.mrb[56].mxu1 %vm449_vm2, %v2547_v1 }
  0x88   : > { %2437 = vmatprep.mubr.msk.bf16.mxu0 %vm449_vm2, %v2548_v2  ;;  %2473 = vmatprep.mubr.msk.bf16.mxu1 %vm449_vm2, %v2549_v3 }
  0x8f   : > { %2438 = vmatmul.mubr.msk.bf16.gmra.mrb[60].mxu0 %vm449_vm2, %v2550_v4  ;;  %2474 = vmatmul.mubr.msk.bf16.gmra.mrb[60].mxu1 %vm449_vm2, %v2551_v5 }
  0xea   : > { %v2764_v6 = vpop.f32.mrb[0].mxu0  ;;  %v2766_v7 = vpop.f32.mrb[0].mxu1 }
  0xeb   : > { %v2768_v8 = vpop.f32.mrb[1].mxu0  ;;  %v2772_v10 = vpop.f32.mrb[1].mxu1 }
  0xec   : > { %v2774_v11 = vpop.f32.mrb[2].mxu0  ;;  %v2778_v13 = vpop.f32.mrb[2].mxu1 }
  0xed   : > { %v2780_v14 = vpop.f32.mrb[3].mxu0  ;;  %v2784_v16 = vpop.f32.mrb[3].mxu1 }
  0xf2   : > { %v2788_v18 = vpop.f32.mrb[4].mxu0  ;;  %v2790_v19 = vpop.f32.mrb[4].mxu1 }
  0xf3   : > { %v2792_v20 = vpop.f32.mrb[5].mxu0  ;;  %v2796_v22 = vpop.f32.mrb[5].mxu1 }
  0xf4   : > { %v2798_v23 = vpop.f32.mrb[6].mxu0  ;;  %v2802_v25 = vpop.f32.mrb[6].mxu1 }
  0xf5   : > { %v2804_v26 = vpop.f32.mrb[7].mxu0  ;;  %v2808_v28 = vpop.f32.mrb[7].mxu1 }
  0xfa   : > { %v2812_v30 = vpop.f32.mrb[8].mxu0  ;;  %v2814_v31 = vpop.f32.mrb[8].mxu1 }
  0xfb   : > { %v2816_v32 = vpop.f32.mrb[9].mxu0  ;;  %v2820_v34 = vpop.f32.mrb[9].mxu1 }
  0xfc   : > { %v2822_v35 = vpop.f32.mrb[10].mxu0  ;;  %v2826_v37 = vpop.f32.mrb[10].mxu1 }
  0xfd   : > { %v2828_v38 = vpop.f32.mrb[11].mxu0  ;;  %v2832_v40 = vpop.f32.mrb[11].mxu1 }
 0x102   : > { %v2836_v42 = vpop.f32.mrb[12].mxu0  ;;  %v2838_v43 = vpop.f32.mrb[12].mxu1 }
 0x103   : > { %v2840_v44 = vpop.f32.mrb[13].mxu0  ;;  %v2844_v46 = vpop.f32.mrb[13].mxu1 }
 0x104   : > { %v2846_v47 = vpop.f32.mrb[14].mxu0  ;;  %v2850_v49 = vpop.f32.mrb[14].mxu1 }
 0x105   : > { %v2852_v50 = vpop.f32.mrb[15].mxu0  ;;  %v2856_v52 = vpop.f32.mrb[15].mxu1 }
 0x10a   : > { %v2860_v54 = vpop.f32.mrb[16].mxu0  ;;  %v2862_v55 = vpop.f32.mrb[16].mxu1 }
 0x10b   : > { %v2864_v56 = vpop.f32.mrb[17].mxu0  ;;  %v2868_v58 = vpop.f32.mrb[17].mxu1 }
 0x10c   : > { %v2870_v59 = vpop.f32.mrb[18].mxu0  ;;  %v2874_v61 = vpop.f32.mrb[18].mxu1 }
 0x10d   : > { %v2876_v62 = vpop.f32.mrb[19].mxu0  ;;  %v2880_v0 = vpop.f32.mrb[19].mxu1 }
 0x112   : > { %v2884_v2 = vpop.f32.mrb[20].mxu0  ;;  %v2886_v3 = vpop.f32.mrb[20].mxu1 }
 0x113   : > { %v2888_v4 = vpop.f32.mrb[21].mxu0  ;;  %v2892_v60 = vpop.f32.mrb[21].mxu1 }
 0x114   : > { %v2894_v57 = vpop.f32.mrb[22].mxu0  ;;  %v2898_v53 = vpop.f32.mrb[22].mxu1 }
 0x115   : > { %v2900_v51 = vpop.f32.mrb[23].mxu0  ;;  %v2904_v48 = vpop.f32.mrb[23].mxu1 }
 0x116   : > { %3187 = vst [vmem:[#allocation2_spill] sm:$0xff] %v2900_v51  ;;  %3188 = vst [vmem:[#allocation3_spill] sm:$0xff] %v2904_v48  ;;  %v3207_v48 = vmax.f32 %v2774_v11, %v2778_v13 }
 0x11a   : > { %v2908_v5 = vpop.f32.mrb[24].mxu0  ;;  %v2910_v41 = vpop.f32.mrb[24].mxu1 }
 0x11b   : > { %3189 = vst [vmem:[#allocation4_spill] sm:$0xff] %v2908_v5  ;;  %3190 = vst [vmem:[#allocation5_spill] sm:$0xff] %v2910_v41  ;;  %v2912_v39 = vpop.f32.mrb[25].mxu0  ;;  %v2916_v36 = vpop.f32.mrb[25].mxu1 }
 0x11c   : > { %3191 = vst [vmem:[#allocation6_spill] sm:$0xff] %v2912_v39  ;;  %3192 = vst [vmem:[#allocation7_spill] sm:$0xff] %v2916_v36  ;;  %v2918_v33 = vpop.f32.mrb[26].mxu0  ;;  %v2922_v29 = vpop.f32.mrb[26].mxu1 }
 0x11d   : > { %3193 = vst [vmem:[#allocation8_spill] sm:$0xff] %v2918_v33  ;;  %3194 = vst [vmem:[#allocation9_spill] sm:$0xff] %v2922_v29  ;;  %v2924_v27 = vpop.f32.mrb[27].mxu0  ;;  %v2928_v24 = vpop.f32.mrb[27].mxu1 }
 0x11e   : > { %3195 = vst [vmem:[#allocation10_spill] sm:$0xff] %v2924_v27  ;;  %3196 = vst [vmem:[#allocation11_spill] sm:$0xff] %v2928_v24 }
 0x122   : > { %v2932_v63 = vpop.f32.mrb[28].mxu0  ;;  %v2934_v17 = vpop.f32.mrb[28].mxu1 }
 0x123   : > { %3197 = vst [vmem:[#allocation12_spill] sm:$0xff] %v2932_v63  ;;  %3198 = vst [vmem:[#allocation13_spill] sm:$0xff] %v2934_v17  ;;  %v2936_v15 = vpop.f32.mrb[29].mxu0  ;;  %v2940_v12 = vpop.f32.mrb[29].mxu1 }
 0x124   : > { %3199 = vst [vmem:[#allocation14_spill] sm:$0xff] %v2936_v15  ;;  %3200 = vst [vmem:[#allocation15_spill] sm:$0xff] %v2940_v12  ;;  %v2942_v9 = vpop.f32.mrb[30].mxu0  ;;  %v2946_v29 = vpop.f32.mrb[30].mxu1 }
 0x125   : > { %3201 = vst [vmem:[#allocation16_spill] sm:$0xff] %v2942_v9  ;;  %3202 = vst [vmem:[#allocation17_spill] sm:$0xff] %v2946_v29  ;;  %v2948_v33 = vpop.f32.mrb[31].mxu0  ;;  %v2952_v24 = vpop.f32.mrb[31].mxu1  ;;  %v3205_v29 = vmax.f32 %v2764_v6, %v2766_v7 }
 0x126   : > { %3203 = vst [vmem:[#allocation18_spill] sm:$0xff] %v2948_v33  ;;  %3204 = vst [vmem:[#allocation19_spill] sm:$0xff] %v2952_v24 }
 0x12a   : > { %v2411_v1 = vpop.f32.mrb[32].mxu0  ;;  %v2447_v17 = vpop.f32.mrb[32].mxu1 }
 0x12b   : > { %v1181_v63 = vpop.f32.mrb[33].mxu0  ;;  %v1663_v36 = vmax.f32 %v2411_v1, %v2447_v17  ;;  %v1502_v39 = vpop.f32.mrb[33].mxu1  ;;  %v3206_v17 = vmax.f32 %v2768_v8, %v2772_v10 }
 0x12c   : > { %v2412_v41 = vpop.f32.mrb[34].mxu0  ;;  %v1661_v12 = vmax.f32 %v1181_v63, %v1502_v39  ;;  %v2448_v15 = vpop.f32.mrb[34].mxu1  ;;  %v3208_v63 = vmax.f32 %v2780_v14, %v2784_v16 }
 0x12d   : > { %v1184_v21 = vpop.f32.mrb[35].mxu0  ;;  %v1695_v9 = vmax.f32 %v3205_v29, %v1663_v36  ;;  %v1664_v27 = vmax.f32 %v2412_v41, %v2448_v15  ;;  %v1505_v24 = vpop.f32.mrb[35].mxu1 }
 0x12e   : > { %v1693_v1 = vmax.f32 %v3206_v17, %v1661_v12  ;;  %v1662_v33 = vmax.f32 %v1184_v21, %v1505_v24 }
 0x12f   : > { %v1734_v5 = vadd.f32 %v2959_v45, %v1695_v9  ;;  %v1696_v51 = vmax.f32 %v3207_v48, %v1664_v27 }
 0x130   : > { %v1732_v39 = vadd.f32 %v2959_v45, %v1693_v1  ;;  %v1694_v6 = vmax.f32 %v3208_v63, %v1662_v33  ;;  %v3210_v63 = vmax.f32 %v2792_v20, %v2796_v22 }
 0x131   : > { %v1766_v7 = vmax.f32 %v1734_v5, 0.0  ;;  %v1735_v15 = vadd.f32 %v2959_v45, %v1696_v51  ;;  %v3209_v51 = vmax.f32 %v2788_v18, %v2790_v19  ;;  %v3212_v19 = vmax.f32 %v2804_v26, %v2808_v28 }
 0x132   : > { %v2415_v29 = vpop.f32.mrb[36].mxu0  ;;  %v1764_v8 = vmax.f32 %v1732_v39, 0.0  ;;  %v1733_v9 = vadd.f32 %v2959_v45, %v1694_v6  ;;  %v2451_v10 = vpop.f32.mrb[36].mxu1 }
 0x133   : > { %v1197_v11 = vpop.f32.mrb[37].mxu0  ;;  %v2231_v12 = vpack.c.bf16 %v1766_v7, %v1766_v7  ;;  %v1767_v13 = vmax.f32 %v1735_v15, 0.0  ;;  %v1667_v14 = vmax.f32 %v2415_v29, %v2451_v10  ;;  %v1518_v16 = vpop.f32.mrb[37].mxu1  ;;  %v3211_v29 = vmax.f32 %v2798_v23, %v2802_v25 }
 0x134   : > { %v2416_v21 = vpop.f32.mrb[38].mxu0  ;;  %v2229_v24 = vpack.c.bf16 %v1764_v8, %v1764_v8  ;;  %v1765_v27 = vmax.f32 %v1733_v9, 0.0  ;;  %v1665_v33 = vmax.f32 %v1197_v11, %v1518_v16  ;;  %v2452_v36 = vpop.f32.mrb[38].mxu1 }
 0x135   : > { %v1200_v41 = vpop.f32.mrb[39].mxu0  ;;  %1927 = vst.msk [vmem:[%s2980_s22 + $0x8] sm:$0xf] %vm1924_vm3, %v2231_v12  ;;  %v2232_v48 = vpack.c.bf16 %v1767_v13, %v1767_v13  ;;  %v1699_v5 = vmax.f32 %v3209_v51, %v1667_v14  ;;  %v1668_v17 = vmax.f32 %v2416_v21, %v2452_v36  ;;  %v1521_v1 = vpop.f32.mrb[39].mxu1 }
 0x136   : > { %1925 = vst.msk [vmem:[%s2980_s22] sm:$0xf] %vm1924_vm3, %v2229_v24  ;;  %v2230_v39 = vpack.c.bf16 %v1765_v27, %v1765_v27  ;;  %v1697_v6 = vmax.f32 %v3210_v63, %v1665_v33  ;;  %v1666_v7 = vmax.f32 %v1200_v41, %v1521_v1 }
 0x137   : > { %1928 = vst.msk [vmem:[%s2980_s22 + $0xc] sm:$0xf] %vm1924_vm3, %v2232_v48  ;;  %v1738_v15 = vadd.f32 %v2959_v45, %v1699_v5  ;;  %v1700_v8 = vmax.f32 %v3211_v29, %v1668_v17  ;;  %v3213_v48 = vmax.f32 %v2812_v30, %v2814_v31  ;;  %v3216_v31 = vmax.f32 %v2828_v38, %v2832_v40 }
 0x138   : > { %1926 = vst.msk [vmem:[%s2980_s22 + $0x4] sm:$0xf] %vm1924_vm3, %v2230_v39  ;;  %v1736_v18 = vadd.f32 %v2959_v45, %v1697_v6  ;;  %v1698_v9 = vmax.f32 %v3212_v19, %v1666_v7  ;;  %v3214_v39 = vmax.f32 %v2816_v32, %v2820_v34 }
 0x139   : > { %v1770_v10 = vmax.f32 %v1738_v15, 0.0  ;;  %v1739_v20 = vadd.f32 %v2959_v45, %v1700_v8  ;;  %v3215_v15 = vmax.f32 %v2822_v35, %v2826_v37 }
 0x13a   : > { %v2419_v22 = vpop.f32.mrb[40].mxu0  ;;  %v1768_v11 = vmax.f32 %v1736_v18, 0.0  ;;  %v1737_v12 = vadd.f32 %v2959_v45, %v1698_v9  ;;  %v2455_v13 = vpop.f32.mrb[40].mxu1 }
 0x13b   : > { %v1213_v14 = vpop.f32.mrb[41].mxu0  ;;  %v2235_v23 = vpack.c.bf16 %v1770_v10, %v1770_v10  ;;  %v1771_v25 = vmax.f32 %v1739_v20, 0.0  ;;  %v1671_v16 = vmax.f32 %v2419_v22, %v2455_v13  ;;  %v1534_v21 = vpop.f32.mrb[41].mxu1 }
 0x13c   : > { %v2420_v24 = vpop.f32.mrb[42].mxu0  ;;  %v2233_v27 = vpack.c.bf16 %v1768_v11, %v1768_v11  ;;  %v1769_v26 = vmax.f32 %v1737_v12, 0.0  ;;  %v1669_v28 = vmax.f32 %v1213_v14, %v1534_v21  ;;  %v2456_v33 = vpop.f32.mrb[42].mxu1 }
 0x13d   : > { %v1216_v36 = vpop.f32.mrb[43].mxu0  ;;  %1931 = vst.msk [vmem:[%s2980_s22 + $0x18] sm:$0xf] %vm1924_vm3, %v2235_v23  ;;  %v2236_v41 = vpack.c.bf16 %v1771_v25, %v1771_v25  ;;  %v1703_v51 = vmax.f32 %v3213_v48, %v1671_v16  ;;  %v1672_v5 = vmax.f32 %v2420_v24, %v2456_v33  ;;  %v1537_v17 = vpop.f32.mrb[43].mxu1  ;;  %v3217_v16 = vmax.f32 %v2836_v42, %v2838_v43 }
 0x13e   : > { %1929 = vst.msk [vmem:[%s2980_s22 + $0x10] sm:$0xf] %vm1924_vm3, %v2233_v27  ;;  %v2234_v1 = vpack.c.bf16 %v1769_v26, %v1769_v26  ;;  %v1701_v63 = vmax.f32 %v3214_v39, %v1669_v28  ;;  %v1670_v6 = vmax.f32 %v1216_v36, %v1537_v17  ;;  %v3218_v28 = vmax.f32 %v2840_v44, %v2844_v46 }
 0x13f   : > { %1932 = vst.msk [vmem:[%s2980_s22 + $0x1c] sm:$0xf] %vm1924_vm3, %v2236_v41  ;;  %v1742_v7 = vadd.f32 %v2959_v45, %v1703_v51  ;;  %v1704_v29 = vmax.f32 %v3215_v15, %v1672_v5  ;;  %v3219_v48 = vmax.f32 %v2846_v47, %v2850_v49  ;;  %v3220_v43 = vmax.f32 %v2852_v50, %v2856_v52 }
 0x140   : > { %1930 = vst.msk [vmem:[%s2980_s22 + $0x14] sm:$0xf] %vm1924_vm3, %v2234_v1  ;;  %v1740_v30 = vadd.f32 %v2959_v45, %v1701_v63  ;;  %v1702_v8 = vmax.f32 %v3216_v31, %v1670_v6 }
 0x141   : > { %v1774_v18 = vmax.f32 %v1742_v7, 0.0  ;;  %v1743_v32 = vadd.f32 %v2959_v45, %v1704_v29 }
 0x142   : > { %v2423_v34 = vpop.f32.mrb[44].mxu0  ;;  %v1772_v19 = vmax.f32 %v1740_v30, 0.0  ;;  %v1741_v9 = vadd.f32 %v2959_v45, %v1702_v8  ;;  %v2459_v10 = vpop.f32.mrb[44].mxu1 }
 0x143   : > { %v1229_v20 = vpop.f32.mrb[45].mxu0  ;;  %v2239_v35 = vpack.c.bf16 %v1774_v18, %v1774_v18  ;;  %v1775_v37 = vmax.f32 %v1743_v32, 0.0  ;;  %v1675_v22 = vmax.f32 %v2423_v34, %v2459_v10  ;;  %v1550_v11 = vpop.f32.mrb[45].mxu1  ;;  %v3221_v32 = vmax.f32 %v2860_v54, %v2862_v55 }
 0x144   : > { %v2424_v12 = vpop.f32.mrb[46].mxu0  ;;  %v2237_v13 = vpack.c.bf16 %v1772_v19, %v1772_v19  ;;  %v1773_v38 = vmax.f32 %v1741_v9, 0.0  ;;  %v1673_v40 = vmax.f32 %v1229_v20, %v1550_v11  ;;  %v2460_v14 = vpop.f32.mrb[46].mxu1  ;;  %v3222_v20 = vmax.f32 %v2864_v56, %v2868_v58 }
 0x145   : > { %v1232_v23 = vpop.f32.mrb[47].mxu0  ;;  %1935 = vst.msk [vmem:[%s2980_s22 + $0x28] sm:$0xf] %vm1924_vm3, %v2239_v35  ;;  %v2240_v25 = vpack.c.bf16 %v1775_v37, %v1775_v37  ;;  %v1707_v21 = vmax.f32 %v3217_v16, %v1675_v22  ;;  %v1676_v24 = vmax.f32 %v2424_v12, %v2460_v14  ;;  %v1553_v27 = vpop.f32.mrb[47].mxu1  ;;  %v3223_v11 = vmax.f32 %v2870_v59, %v2874_v61 }
 0x146   : > { %1933 = vst.msk [vmem:[%s2980_s22 + $0x20] sm:$0xf] %vm1924_vm3, %v2237_v13  ;;  %v2238_v26 = vpack.c.bf16 %v1773_v38, %v1773_v38  ;;  %v1705_v33 = vmax.f32 %v3218_v28, %v1673_v40  ;;  %v1674_v36 = vmax.f32 %v1232_v23, %v1553_v27  ;;  %v3224_v55 = vmax.f32 %v2876_v62, %v2880_v0 }
 0x147   : > { %1936 = vst.msk [vmem:[%s2980_s22 + $0x2c] sm:$0xf] %vm1924_vm3, %v2240_v25  ;;  %v1746_v41 = vadd.f32 %v2959_v45, %v1707_v21  ;;  %v1708_v51 = vmax.f32 %v3219_v48, %v1676_v24 }
 0x148   : > { %1934 = vst.msk [vmem:[%s2980_s22 + $0x24] sm:$0xf] %vm1924_vm3, %v2238_v26  ;;  %v1744_v42 = vadd.f32 %v2959_v45, %v1705_v33  ;;  %v1706_v5 = vmax.f32 %v3220_v43, %v1674_v36  ;;  %v3225_v36 = vmax.f32 %v2884_v2, %v2886_v3  ;;  %v3226_v43 = vmax.f32 %v2888_v4, %v2892_v60  ;;  %v3228_v3 = vld [vmem:[#allocation2_spill] sm:$0xff] }
 0x149   : > { %v1778_v17 = vmax.f32 %v1746_v41, 0.0  ;;  %v1747_v44 = vadd.f32 %v2959_v45, %v1708_v51 }
 0x14a   : > { %v2427_v46 = vpop.f32.mrb[48].mxu0  ;;  %v1776_v1 = vmax.f32 %v1744_v42, 0.0  ;;  %v1745_v39 = vadd.f32 %v2959_v45, %v1706_v5  ;;  %v2463_v63 = vpop.f32.mrb[48].mxu1 }
 0x14b   : > { %v1245_v6 = vpop.f32.mrb[49].mxu0  ;;  %v2243_v47 = vpack.c.bf16 %v1778_v17, %v1778_v17  ;;  %v1779_v49 = vmax.f32 %v1747_v44, 0.0  ;;  %v1679_v7 = vmax.f32 %v2427_v46, %v2463_v63  ;;  %v1566_v15 = vpop.f32.mrb[49].mxu1  ;;  %v3227_v46 = vmax.f32 %v2894_v57, %v2898_v53 }
 0x14c   : > { %v2428_v29 = vpop.f32.mrb[50].mxu0  ;;  %v2241_v30 = vpack.c.bf16 %v1776_v1, %v1776_v1  ;;  %v1777_v50 = vmax.f32 %v1745_v39, 0.0  ;;  %v1677_v52 = vmax.f32 %v1245_v6, %v1566_v15  ;;  %v2464_v31 = vpop.f32.mrb[50].mxu1  ;;  %v3229_v39 = vld [vmem:[#allocation3_spill] sm:$0xff] }
 0x14d   : > { %v1248_v8 = vpop.f32.mrb[51].mxu0  ;;  %1939 = vst.msk [vmem:[%s2980_s22 + $0x38] sm:$0xf] %vm1924_vm3, %v2243_v47  ;;  %v2244_v18 = vpack.c.bf16 %v1779_v49, %v1779_v49  ;;  %v1711_v34 = vmax.f32 %v3221_v32, %v1679_v7  ;;  %v1680_v19 = vmax.f32 %v2428_v29, %v2464_v31  ;;  %v1569_v9 = vpop.f32.mrb[51].mxu1  ;;  %v3230_v63 = vmax.f32 %v3228_v3, %v3229_v39  ;;  %v3244_v3 = vld [vmem:[#allocation13_spill] sm:$0xff] }
 0x14e   : > { %1937 = vst.msk [vmem:[%s2980_s22 + $0x30] sm:$0xf] %vm1924_vm3, %v2241_v30  ;;  %v2242_v10 = vpack.c.bf16 %v1777_v50, %v1777_v50  ;;  %v1709_v35 = vmax.f32 %v3222_v20, %v1677_v52  ;;  %v1678_v37 = vmax.f32 %v1248_v8, %v1569_v9  ;;  %v3231_v9 = vld [vmem:[#allocation4_spill] sm:$0xff] }
 0x14f   : > { %1940 = vst.msk [vmem:[%s2980_s22 + $0x3c] sm:$0xf] %vm1924_vm3, %v2244_v18  ;;  %v1750_v22 = vadd.f32 %v2959_v45, %v1711_v34  ;;  %v1712_v12 = vmax.f32 %v3223_v11, %v1680_v19 }
 0x150   : > { %1938 = vst.msk [vmem:[%s2980_s22 + $0x34] sm:$0xf] %vm1924_vm3, %v2242_v10  ;;  %v1748_v54 = vadd.f32 %v2959_v45, %v1709_v35  ;;  %v1710_v13 = vmax.f32 %v3224_v55, %v1678_v37  ;;  %v3232_v10 = vld [vmem:[#allocation5_spill] sm:$0xff] }
 0x151   : > { %v1782_v38 = vmax.f32 %v1750_v22, 0.0  ;;  %v1751_v56 = vadd.f32 %v2959_v45, %v1712_v12  ;;  %v3233_v20 = vmax.f32 %v3231_v9, %v3232_v10  ;;  %v3234_v12 = vld [vmem:[#allocation6_spill] sm:$0xff] }
 0x152   : > { %v2431_v58 = vpop.f32.mrb[52].mxu0  ;;  %v1780_v40 = vmax.f32 %v1748_v54, 0.0  ;;  %v1749_v14 = vadd.f32 %v2959_v45, %v1710_v13  ;;  %v2467_v23 = vpop.f32.mrb[52].mxu1  ;;  %v3235_v54 = vld [vmem:[#allocation7_spill] sm:$0xff] }
 0x153   : > { %v1261_v25 = vpop.f32.mrb[53].mxu0  ;;  %v2247_v59 = vpack.c.bf16 %v1782_v38, %v1782_v38  ;;  %v1783_v61 = vmax.f32 %v1751_v56, 0.0  ;;  %v1683_v16 = vmax.f32 %v2431_v58, %v2467_v23  ;;  %v1582_v21 = vpop.f32.mrb[53].mxu1  ;;  %v3236_v55 = vmax.f32 %v3234_v12, %v3235_v54  ;;  %v3237_v58 = vld [vmem:[#allocation8_spill] sm:$0xff] }
 0x154   : > { %v2432_v24 = vpop.f32.mrb[54].mxu0  ;;  %v2245_v27 = vpack.c.bf16 %v1780_v40, %v1780_v40  ;;  %v1781_v62 = vmax.f32 %v1749_v14, 0.0  ;;  %v1681_v0 = vmax.f32 %v1261_v25, %v1582_v21  ;;  %v2468_v26 = vpop.f32.mrb[54].mxu1  ;;  %v3238_v40 = vld [vmem:[#allocation9_spill] sm:$0xff] }
 0x155   : > { %v1264_v28 = vpop.f32.mrb[55].mxu0  ;;  %1943 = vst.msk [vmem:[%s2980_s22 + $0x48] sm:$0xf] %vm1924_vm3, %v2247_v59  ;;  %v2248_v33 = vpack.c.bf16 %v1783_v61, %v1783_v61  ;;  %v1715_v41 = vmax.f32 %v3225_v36, %v1683_v16  ;;  %v1684_v48 = vmax.f32 %v2432_v24, %v2468_v26  ;;  %v1585_v51 = vpop.f32.mrb[55].mxu1  ;;  %v3239_v14 = vmax.f32 %v3237_v58, %v3238_v40  ;;  %v3240_v59 = vld [vmem:[#allocation10_spill] sm:$0xff]  ;;  %v3241_v61 = vld [vmem:[#allocation11_spill] sm:$0xff] }
 0x156   : > { %1941 = vst.msk [vmem:[%s2980_s22 + $0x40] sm:$0xf] %vm1924_vm3, %v2245_v27  ;;  %v2246_v42 = vpack.c.bf16 %v1781_v62, %v1781_v62  ;;  %v1713_v5 = vmax.f32 %v3226_v43, %v1681_v0  ;;  %v1682_v17 = vmax.f32 %v1264_v28, %v1585_v51  ;;  %v3242_v16 = vmax.f32 %v3240_v59, %v3241_v61 }
 0x157   : > { %1944 = vst.msk [vmem:[%s2980_s22 + $0x4c] sm:$0xf] %vm1924_vm3, %v2248_v33  ;;  %v1754_v44 = vadd.f32 %v2959_v45, %v1715_v41  ;;  %v1716_v1 = vmax.f32 %v3227_v46, %v1684_v48 }
 0x158   : > { %1942 = vst.msk [vmem:[%s2980_s22 + $0x44] sm:$0xf] %vm1924_vm3, %v2246_v42  ;;  %v1752_v2 = vadd.f32 %v2959_v45, %v1713_v5  ;;  %v1714_v6 = vmax.f32 %v3230_v63, %v1682_v17 }
 0x159   : > { %v1786_v47 = vmax.f32 %v1754_v44, 0.0  ;;  %v1755_v60 = vadd.f32 %v2959_v45, %v1716_v1 }
 0x15a   : > { %v2435_v4 = vpop.f32.mrb[56].mxu0  ;;  %v1784_v49 = vmax.f32 %v1752_v2, 0.0  ;;  %v1753_v7 = vadd.f32 %v2959_v45, %v1714_v6  ;;  %v2471_v15 = vpop.f32.mrb[56].mxu1  ;;  %v3243_v2 = vld [vmem:[#allocation12_spill] sm:$0xff] }
 0x15b   : > { %v1277_v29 = vpop.f32.mrb[57].mxu0  ;;  %v2251_v53 = vpack.c.bf16 %v1786_v47, %v1786_v47  ;;  %v1787_v57 = vmax.f32 %v1755_v60, 0.0  ;;  %v1687_v30 = vmax.f32 %v2435_v4, %v2471_v15  ;;  %v1598_v50 = vpop.f32.mrb[57].mxu1  ;;  %v3245_v39 = vmax.f32 %v3243_v2, %v3244_v3  ;;  %v3246_v4 = vld [vmem:[#allocation14_spill] sm:$0xff] }
 0x15c   : > { %v2436_v52 = vpop.f32.mrb[58].mxu0  ;;  %v2249_v31 = vpack.c.bf16 %v1784_v49, %v1784_v49  ;;  %v1785_v8 = vmax.f32 %v1753_v7, 0.0  ;;  %v1685_v18 = vmax.f32 %v1277_v29, %v1598_v50  ;;  %v2472_v32 = vpop.f32.mrb[58].mxu1  ;;  %v3247_v49 = vld [vmem:[#allocation15_spill] sm:$0xff] }
 0x15d   : > { %v1280_v34 = vpop.f32.mrb[59].mxu0  ;;  %1947 = vst.msk [vmem:[%s2980_s22 + $0x58] sm:$0xf] %vm1924_vm3, %v2251_v53  ;;  %v2252_v19 = vpack.c.bf16 %v1787_v57, %v1787_v57  ;;  %v1719_v35 = vmax.f32 %v3233_v20, %v1687_v30  ;;  %v1688_v37 = vmax.f32 %v2436_v52, %v2472_v32  ;;  %v1601_v22 = vpop.f32.mrb[59].mxu1  ;;  %v3248_v7 = vmax.f32 %v3246_v4, %v3247_v49  ;;  %v3249_v57 = vld [vmem:[#allocation16_spill] sm:$0xff]  ;;  %v3250_v30 = vld [vmem:[#allocation17_spill] sm:$0xff] }
 0x15e   : > { %1945 = vst.msk [vmem:[%s2980_s22 + $0x50] sm:$0xf] %vm1924_vm3, %v2249_v31  ;;  %v2250_v11 = vpack.c.bf16 %v1785_v8, %v1785_v8  ;;  %v1717_v13 = vmax.f32 %v3236_v55, %v1685_v18  ;;  %v1686_v38 = vmax.f32 %v1280_v34, %v1601_v22  ;;  %v3251_v50 = vmax.f32 %v3249_v57, %v3250_v30  ;;  %v3252_v8 = vld [vmem:[#allocation18_spill] sm:$0xff]  ;;  %v3253_v18 = vld [vmem:[#allocation19_spill] sm:$0xff] }
 0x15f   : > { %1948 = vst.msk [vmem:[%s2980_s22 + $0x5c] sm:$0xf] %vm1924_vm3, %v2252_v19  ;;  %v1758_v56 = vadd.f32 %v2959_v45, %v1719_v35  ;;  %v1720_v23 = vmax.f32 %v3239_v14, %v1688_v37  ;;  %v3254_v32 = vmax.f32 %v3252_v8, %v3253_v18 }
 0x160   : > { %1946 = vst.msk [vmem:[%s2980_s22 + $0x54] sm:$0xf] %vm1924_vm3, %v2250_v11  ;;  %v1756_v25 = vadd.f32 %v2959_v45, %v1717_v13  ;;  %v1718_v21 = vmax.f32 %v3242_v16, %v1686_v38 }
 0x161   : > { %v1790_v24 = vmax.f32 %v1758_v56, 0.0  ;;  %v1759_v27 = vadd.f32 %v2959_v45, %v1720_v23 }
 0x162   : > { %v2439_v62 = vpop.f32.mrb[60].mxu0  ;;  %v1788_v0 = vmax.f32 %v1756_v25, 0.0  ;;  %v1757_v26 = vadd.f32 %v2959_v45, %v1718_v21  ;;  %v2475_v28 = vpop.f32.mrb[60].mxu1 }
 0x163   : > { %v1293_v33 = vpop.f32.mrb[61].mxu0  ;;  %v2255_v36 = vpack.c.bf16 %v1790_v24, %v1790_v24  ;;  %v1791_v41 = vmax.f32 %v1759_v27, 0.0  ;;  %v1691_v48 = vmax.f32 %v2439_v62, %v2475_v28  ;;  %v1614_v51 = vpop.f32.mrb[61].mxu1 }
 0x164   : > { %v2440_v42 = vpop.f32.mrb[62].mxu0  ;;  %v2253_v43 = vpack.c.bf16 %v1788_v0, %v1788_v0  ;;  %v1789_v5 = vmax.f32 %v1757_v26, 0.0  ;;  %v1689_v17 = vmax.f32 %v1293_v33, %v1614_v51  ;;  %v2476_v44 = vpop.f32.mrb[62].mxu1 }
 0x165   : > { %v1296_v46 = vpop.f32.mrb[63].mxu0  ;;  %1951 = vst.msk [vmem:[%s2980_s22 + $0x68] sm:$0xf] %vm1924_vm3, %v2255_v36  ;;  %v2256_v1 = vpack.c.bf16 %v1791_v41, %v1791_v41  ;;  %v1723_v63 = vmax.f32 %v3245_v39, %v1691_v48  ;;  %v1692_v6 = vmax.f32 %v2440_v42, %v2476_v44  ;;  %v1617_v47 = vpop.f32.mrb[63].mxu1 }
 0x166   : > { %1949 = vst.msk [vmem:[%s2980_s22 + $0x60] sm:$0xf] %vm1924_vm3, %v2253_v43  ;;  %v2254_v60 = vpack.c.bf16 %v1789_v5, %v1789_v5  ;;  %v1721_v15 = vmax.f32 %v3248_v7, %v1689_v17  ;;  %v1690_v29 = vmax.f32 %v1296_v46, %v1617_v47 }
 0x167   : > { %1952 = vst.msk [vmem:[%s2980_s22 + $0x6c] sm:$0xf] %vm1924_vm3, %v2256_v1  ;;  %v1762_v53 = vadd.f32 %v2959_v45, %v1723_v63  ;;  %v1724_v52 = vmax.f32 %v3251_v50, %v1692_v6 }
 0x168   : > { %1950 = vst.msk [vmem:[%s2980_s22 + $0x64] sm:$0xf] %vm1924_vm3, %v2254_v60  ;;  %v1760_v31 = vadd.f32 %v2959_v45, %v1721_v15  ;;  %v1722_v34 = vmax.f32 %v3254_v32, %v1690_v29 }
 0x169   : > { %v1794_v19 = vmax.f32 %v1762_v53, 0.0  ;;  %v1763_v9 = vadd.f32 %v2959_v45, %v1724_v52 }
 0x16a   : > { %v1792_v10 = vmax.f32 %v1760_v31, 0.0  ;;  %v1761_v20 = vadd.f32 %v2959_v45, %v1722_v34 }
 0x16b   : > { %v2259_v35 = vpack.c.bf16 %v1794_v19, %v1794_v19  ;;  %v1795_v37 = vmax.f32 %v1763_v9, 0.0 }
 0x16c   : > { %v2257_v22 = vpack.c.bf16 %v1792_v10, %v1792_v10  ;;  %v1793_v11 = vmax.f32 %v1761_v20, 0.0 }
 0x16d   : > { %1955 = vst.msk [vmem:[%s2980_s22 + $0x78] sm:$0xf] %vm1924_vm3, %v2259_v35  ;;  %v2260_v12 = vpack.c.bf16 %v1795_v37, %v1795_v37 }
 0x16e   : > { %1953 = vst.msk [vmem:[%s2980_s22 + $0x70] sm:$0xf] %vm1924_vm3, %v2257_v22  ;;  %v2258_v54 = vpack.c.bf16 %v1793_v11, %v1793_v11 }
 0x16f   : > { %1956 = vst.msk [vmem:[%s2980_s22 + $0x7c] sm:$0xf] %vm1924_vm3, %v2260_v12 }
 0x170   : > { %1954 = vst.msk [vmem:[%s2980_s22 + $0x74] sm:$0xf] %vm1924_vm3, %v2258_v54 }
 0x171 PF: > { %s16_s21 = sadd.s32 1, %s2558_s21  }
 0x172   : > { %p13_p4 = scmp.ge.s32.totalorder %s16_s21, 4  }
 0x174   :  { %15 = sbr.rel (!%p13_p4) target bundleno = 1 (0x1), region = 83 }

// kernel: cnn_forward.4
= control target key start
LH: loop header
LB: loop body
LE: loop exit
PB: predicated region body
PF: predicated region fallthrough
CT: control target
= control target key end

     0   :  { %v805_v0 = vmov 0   ;;  %vm140_vm0 = vcmask 130048   ;;  %vm660_vm1 = vcmask 257024   ;;  %s1145_s4 = inlined_call_operand.vmem [shape: bf16[144,32], index: 4, kind: input, shape index: {}]   ;;  %s1146_s0 = inlined_call_operand.vmem [shape: bf16[64,144], index: 0, kind: input, shape index: {}]   ;;  %s1147_s1 = inlined_call_operand.vmem [shape: bf16[64,144], index: 1, kind: input, shape index: {}]   ;;  %s1148_s2 = inlined_call_operand.vmem [shape: bf16[64,144], index: 2, kind: input, shape index: {}]   ;;  %s1149_s3 = inlined_call_operand.vmem [shape: bf16[64,144], index: 3, kind: input, shape index: {}]   ;;  %s1150_s5 = inlined_call_operand.vmem [shape: f32[1,32], index: 5, kind: input, shape index: {}]   ;;  %s1151_s6 = inlined_call_operand.vmem [shape: bf16[64,32], index: 6, kind: output, shape index: {}]  }
   0x1   :  { %153 = vmatprep.subr.bf16.mxu0 %v805_v0  ;;  %274 = vmatprep.subr.bf16.mxu1 %v805_v0  ;;  %v748_v1 = vld [vmem:[%s1145_s4] sm:$0xff]   ;;  %v849_v2 = vld [vmem:[%s1145_s4 + $0x8] sm:$0xff]   ;;  %v858_v3 = vld [vmem:[%s1145_s4 + $0x10] sm:$0xff]  }
   0x2   :  { %154 = vmatpush1.bf16.msra.mxu0 %v748_v1  ;;  %275 = vmatpush1.bf16.msra.mxu1 %v748_v1  ;;  %v865_v4 = vld [vmem:[%s1145_s4 + $0x18] sm:$0xff]   ;;  %v759_v5 = vld [vmem:[%s1146_s0 + $0x4] ss:$8 sps:$4 sm:$0xff]   ;;  %v902_v9 = vld [vmem:[%s1145_s4 + $0x30] sm:$0xff]  }
   0x3   :  { %155 = vmatprep.subr.bf16.mxu0 %v805_v0  ;;  %276 = vmatprep.subr.bf16.mxu1 %v805_v0  ;;  %v762_v6 = vld [vmem:[%s1147_s1 + $0x4] ss:$8 sps:$4 sm:$0xff]   ;;  %v911_v10 = vld [vmem:[%s1145_s4 + $0x38] sm:$0xff]   ;;  %v757_v12 = vld [vmem:[%s1146_s0] ss:$8 sps:$4 sm:$0xff]  }
   0x4   :  { %690 = vmatprep.mubr.msk.bf16.mxu0 %vm140_vm0, %v759_v5  ;;  %702 = vmatprep.mubr.msk.bf16.mxu1 %vm140_vm0, %v762_v6  ;;  %v884_v7 = vld [vmem:[%s1145_s4 + $0x20] sm:$0xff]   ;;  %v893_v8 = vld [vmem:[%s1145_s4 + $0x28] sm:$0xff]   ;;  %v763_v14 = vld [vmem:[%s1146_s0 + $0x14] ss:$8 sps:$4 sm:$0xff]  }
   0x5   :  { %v920_v11 = vld [vmem:[%s1145_s4 + $0x40] sm:$0xff]   ;;  %v765_v15 = vld [vmem:[%s1147_s1 + $0x14] ss:$8 sps:$4 sm:$0xff]   ;;  %v767_v16 = vld [vmem:[%s1146_s0 + $0x10] ss:$8 sps:$4 sm:$0xff]  }
   0x6   :  { %156 = vmatpush1.bf16.msra.mxu0 %v849_v2  ;;  %277 = vmatpush1.bf16.msra.mxu1 %v849_v2  ;;  %v760_v13 = vld [vmem:[%s1147_s1] ss:$8 sps:$4 sm:$0xff]   ;;  %v768_v17 = vld [vmem:[%s1147_s1 + $0x10] ss:$8 sps:$4 sm:$0xff]   ;;  %v769_v18 = vld [vmem:[%s1146_s0 + $0x24] ss:$8 sps:$4 sm:$0xff]  }
   0x7   :  { %157 = vmatprep.subr.bf16.mxu0 %v805_v0  ;;  %278 = vmatprep.subr.bf16.mxu1 %v805_v0  ;;  %v771_v19 = vld [vmem:[%s1147_s1 + $0x24] ss:$8 sps:$4 sm:$0xff]   ;;  %v773_v20 = vld [vmem:[%s1146_s0 + $0x20] ss:$8 sps:$4 sm:$0xff]   ;;  %v775_v22 = vld [vmem:[%s1146_s0 + $0x34] ss:$8 sps:$4 sm:$0xff]  }
   0x8   :  { %v774_v21 = vld [vmem:[%s1147_s1 + $0x20] ss:$8 sps:$4 sm:$0xff]   ;;  %v777_v23 = vld [vmem:[%s1147_s1 + $0x34] ss:$8 sps:$4 sm:$0xff]   ;;  %v779_v24 = vld [vmem:[%s1146_s0 + $0x30] ss:$8 sps:$4 sm:$0xff]  }
   0x9   :  { %v780_v25 = vld [vmem:[%s1147_s1 + $0x30] ss:$8 sps:$4 sm:$0xff]   ;;  %v783_v26 = vld [vmem:[%s1148_s2 + $0x4] ss:$8 sps:$4 sm:$0xff]   ;;  %v781_v28 = vld [vmem:[%s1148_s2] ss:$8 sps:$4 sm:$0xff]  }
   0xa   :  { %158 = vmatpush1.bf16.msra.mxu0 %v858_v3  ;;  %279 = vmatpush1.bf16.msra.mxu1 %v858_v3  ;;  %v786_v27 = vld [vmem:[%s1149_s3 + $0x4] ss:$8 sps:$4 sm:$0xff]   ;;  %v784_v29 = vld [vmem:[%s1149_s3] ss:$8 sps:$4 sm:$0xff]   ;;  %v787_v30 = vld [vmem:[%s1148_s2 + $0x14] ss:$8 sps:$4 sm:$0xff]  }
   0xb   :  { %159 = vmatprep.subr.bf16.mxu0 %v805_v0  ;;  %280 = vmatprep.subr.bf16.mxu1 %v805_v0  ;;  %v789_v31 = vld [vmem:[%s1149_s3 + $0x14] ss:$8 sps:$4 sm:$0xff]   ;;  %v791_v32 = vld [vmem:[%s1148_s2 + $0x10] ss:$8 sps:$4 sm:$0xff]   ;;  %v793_v34 = vld [vmem:[%s1148_s2 + $0x24] ss:$8 sps:$4 sm:$0xff]  }
   0xc   :  { %v792_v33 = vld [vmem:[%s1149_s3 + $0x10] ss:$8 sps:$4 sm:$0xff]   ;;  %v795_v35 = vld [vmem:[%s1149_s3 + $0x24] ss:$8 sps:$4 sm:$0xff]   ;;  %v797_v36 = vld [vmem:[%s1148_s2 + $0x20] ss:$8 sps:$4 sm:$0xff]  }
   0xd   :  { %v798_v37 = vld [vmem:[%s1149_s3 + $0x20] ss:$8 sps:$4 sm:$0xff]   ;;  %v799_v38 = vld [vmem:[%s1148_s2 + $0x34] ss:$8 sps:$4 sm:$0xff]   ;;  %v803_v40 = vld [vmem:[%s1148_s2 + $0x30] ss:$8 sps:$4 sm:$0xff]  }
   0xe   :  { %160 = vmatpush1.bf16.msra.mxu0 %v865_v4  ;;  %281 = vmatpush1.bf16.msra.mxu1 %v865_v4  ;;  %v801_v39 = vld [vmem:[%s1149_s3 + $0x34] ss:$8 sps:$4 sm:$0xff]   ;;  %v804_v41 = vld [vmem:[%s1149_s3 + $0x30] ss:$8 sps:$4 sm:$0xff]  }
   0xf   :  { %161 = vmatprep.subr.bf16.mxu0 %v805_v0  ;;  %282 = vmatprep.subr.bf16.mxu1 %v805_v0 }
  0x12   :  { %162 = vmatpush1.bf16.msra.mxu0 %v884_v7  ;;  %283 = vmatpush1.bf16.msra.mxu1 %v884_v7 }
  0x13   :  { %163 = vmatprep.subr.bf16.mxu0 %v805_v0  ;;  %284 = vmatprep.subr.bf16.mxu1 %v805_v0 }
  0x16   :  { %164 = vmatpush1.bf16.msra.mxu0 %v893_v8  ;;  %285 = vmatpush1.bf16.msra.mxu1 %v893_v8 }
  0x17   :  { %165 = vmatprep.subr.bf16.mxu0 %v805_v0  ;;  %286 = vmatprep.subr.bf16.mxu1 %v805_v0 }
  0x1a   :  { %166 = vmatpush1.bf16.msra.mxu0 %v902_v9  ;;  %287 = vmatpush1.bf16.msra.mxu1 %v902_v9 }
  0x1b   :  { %167 = vmatprep.subr.bf16.mxu0 %v805_v0  ;;  %288 = vmatprep.subr.bf16.mxu1 %v805_v0 }
  0x1e   :  { %168 = vmatpush1.bf16.msra.mxu0 %v911_v10  ;;  %289 = vmatpush1.bf16.msra.mxu1 %v911_v10 }
  0x1f   :  { %169 = vmatprep.subr.bf16.mxu0 %v805_v0  ;;  %290 = vmatprep.subr.bf16.mxu1 %v805_v0 }
  0x22   :  { %170 = vmatpush1.bf16.msra.mxu0 %v920_v11  ;;  %291 = vmatpush1.bf16.msra.mxu1 %v920_v11 }
  0x23   :  { %395 = vmatprep.subr.bf16.mxu0 %v805_v0  ;;  %516 = vmatprep.subr.bf16.mxu1 %v805_v0 }
  0x25   :  { %186 = vmatmul.mubr.bf16.vlgmr.msra.gmra.mrb[0].mxu0 %v757_v12  ;;  %307 = vmatmul.mubr.bf16.vlgmr.msra.gmra.mrb[0].mxu1 %v760_v13 }
  0x26   :  { %396 = vmatpush1.bf16.msra.mxu0 %v748_v1  ;;  %517 = vmatpush1.bf16.msra.mxu1 %v748_v1 }
  0x27   :  { %397 = vmatprep.subr.bf16.mxu0 %v805_v0  ;;  %518 = vmatprep.subr.bf16.mxu1 %v805_v0 }
  0x28   :  { %691 = vmatprep.mubr.msk.bf16.mxu0 %vm140_vm0, %v763_v14  ;;  %703 = vmatprep.mubr.msk.bf16.mxu1 %vm140_vm0, %v765_v15 }
  0x2a   :  { %398 = vmatpush1.bf16.msra.mxu0 %v849_v2  ;;  %519 = vmatpush1.bf16.msra.mxu1 %v849_v2 }
  0x2b   :  { %399 = vmatprep.subr.bf16.mxu0 %v805_v0  ;;  %520 = vmatprep.subr.bf16.mxu1 %v805_v0 }
  0x2d   :  { %194 = vmatmul.mubr.bf16.gmra.mrb[4].mxu0 %v767_v16  ;;  %315 = vmatmul.mubr.bf16.gmra.mrb[4].mxu1 %v768_v17 }
  0x2e   :  { %400 = vmatpush1.bf16.msra.mxu0 %v858_v3  ;;  %521 = vmatpush1.bf16.msra.mxu1 %v858_v3 }
  0x2f   :  { %401 = vmatprep.subr.bf16.mxu0 %v805_v0  ;;  %522 = vmatprep.subr.bf16.mxu1 %v805_v0 }
  0x30   :  { %692 = vmatprep.mubr.msk.bf16.mxu0 %vm140_vm0, %v769_v18  ;;  %704 = vmatprep.mubr.msk.bf16.mxu1 %vm140_vm0, %v771_v19 }
  0x32   :  { %402 = vmatpush1.bf16.msra.mxu0 %v865_v4  ;;  %523 = vmatpush1.bf16.msra.mxu1 %v865_v4 }
  0x33   :  { %403 = vmatprep.subr.bf16.mxu0 %v805_v0  ;;  %524 = vmatprep.subr.bf16.mxu1 %v805_v0 }
  0x35   :  { %202 = vmatmul.mubr.bf16.gmra.mrb[8].mxu0 %v773_v20  ;;  %323 = vmatmul.mubr.bf16.gmra.mrb[8].mxu1 %v774_v21 }
  0x36   :  { %404 = vmatpush1.bf16.msra.mxu0 %v884_v7  ;;  %525 = vmatpush1.bf16.msra.mxu1 %v884_v7 }
  0x37   :  { %405 = vmatprep.subr.bf16.mxu0 %v805_v0  ;;  %526 = vmatprep.subr.bf16.mxu1 %v805_v0 }
  0x38   :  { %693 = vmatprep.mubr.msk.bf16.mxu0 %vm140_vm0, %v775_v22  ;;  %705 = vmatprep.mubr.msk.bf16.mxu1 %vm140_vm0, %v777_v23  ;;  %v1091_v23 = vld [vmem:[%s1150_s5] ss:$0 sm:$0xff] }
  0x3a   :  { %406 = vmatpush1.bf16.msra.mxu0 %v893_v8  ;;  %527 = vmatpush1.bf16.msra.mxu1 %v893_v8 }
  0x3b   :  { %407 = vmatprep.subr.bf16.mxu0 %v805_v0  ;;  %528 = vmatprep.subr.bf16.mxu1 %v805_v0 }
  0x3d   :  { %210 = vmatmul.mubr.bf16.gmra.mrb[12].mxu0 %v779_v24  ;;  %331 = vmatmul.mubr.bf16.gmra.mrb[12].mxu1 %v780_v25 }
  0x3e   :  { %408 = vmatpush1.bf16.msra.mxu0 %v902_v9  ;;  %529 = vmatpush1.bf16.msra.mxu1 %v902_v9 }
  0x3f   :  { %409 = vmatprep.subr.bf16.mxu0 %v805_v0  ;;  %530 = vmatprep.subr.bf16.mxu1 %v805_v0 }
  0x40   :  { %714 = vmatprep.mubr.msk.bf16.mxu0 %vm140_vm0, %v783_v26  ;;  %726 = vmatprep.mubr.msk.bf16.mxu1 %vm140_vm0, %v786_v27 }
  0x42   :  { %410 = vmatpush1.bf16.msra.mxu0 %v911_v10  ;;  %531 = vmatpush1.bf16.msra.mxu1 %v911_v10 }
  0x43   :  { %411 = vmatprep.subr.bf16.mxu0 %v805_v0  ;;  %532 = vmatprep.subr.bf16.mxu1 %v805_v0 }
  0x46   :  { %412 = vmatpush1.bf16.msra.mxu0 %v920_v11  ;;  %533 = vmatpush1.bf16.msra.mxu1 %v920_v11 }
  0x49   :  { %428 = vmatmul.mubr.bf16.vlgmr.msra.gmra.mrb[16].mxu0 %v781_v28  ;;  %549 = vmatmul.mubr.bf16.vlgmr.msra.gmra.mrb[16].mxu1 %v784_v29 }
  0x4a   :  { %715 = vmatprep.mubr.msk.bf16.mxu0 %vm140_vm0, %v787_v30  ;;  %727 = vmatprep.mubr.msk.bf16.mxu1 %vm140_vm0, %v789_v31 }
  0x51   :  { %436 = vmatmul.mubr.bf16.gmra.mrb[20].mxu0 %v791_v32  ;;  %557 = vmatmul.mubr.bf16.gmra.mrb[20].mxu1 %v792_v33 }
  0x52   :  { %716 = vmatprep.mubr.msk.bf16.mxu0 %vm140_vm0, %v793_v34  ;;  %728 = vmatprep.mubr.msk.bf16.mxu1 %vm140_vm0, %v795_v35 }
  0x59   :  { %444 = vmatmul.mubr.bf16.gmra.mrb[24].mxu0 %v797_v36  ;;  %565 = vmatmul.mubr.bf16.gmra.mrb[24].mxu1 %v798_v37 }
  0x5a   :  { %717 = vmatprep.mubr.msk.bf16.mxu0 %vm140_vm0, %v799_v38  ;;  %729 = vmatprep.mubr.msk.bf16.mxu1 %vm140_vm0, %v801_v39 }
  0x61   :  { %452 = vmatmul.mubr.bf16.gmra.mrb[28].mxu0 %v803_v40  ;;  %573 = vmatmul.mubr.bf16.gmra.mrb[28].mxu1 %v804_v41 }
  0xf8   :  { %v187_v42 = vpop.f32.mrb[0].mxu0  ;;  %v308_v43 = vpop.f32.mrb[0].mxu1 }
  0xf9   :  { %v581_v44 = vmax.f32 %v187_v42, %v308_v43  ;;  %v189_v45 = vpop.f32.mrb[1].mxu0  ;;  %v310_v46 = vpop.f32.mrb[1].mxu1 }
  0xfa   :  { %v190_v47 = vpop.f32.mrb[2].mxu0  ;;  %v311_v48 = vpop.f32.mrb[2].mxu1 }
  0xfb   :  { %v582_v49 = vmax.f32 %v190_v47, %v311_v48  ;;  %v192_v50 = vpop.f32.mrb[3].mxu0  ;;  %v313_v51 = vpop.f32.mrb[3].mxu1 }
 0x100   :  { %v195_v52 = vpop.f32.mrb[4].mxu0  ;;  %v316_v53 = vpop.f32.mrb[4].mxu1 }
 0x101   :  { %v583_v54 = vmax.f32 %v195_v52, %v316_v53  ;;  %v197_v55 = vpop.f32.mrb[5].mxu0  ;;  %v318_v56 = vpop.f32.mrb[5].mxu1 }
 0x102   :  { %v198_v57 = vpop.f32.mrb[6].mxu0  ;;  %v319_v58 = vpop.f32.mrb[6].mxu1 }
 0x103   :  { %v584_v59 = vmax.f32 %v198_v57, %v319_v58  ;;  %v200_v60 = vpop.f32.mrb[7].mxu0  ;;  %v321_v61 = vpop.f32.mrb[7].mxu1 }
 0x108   :  { %v1064_v62 = vpop.f32.mrb[8].mxu0  ;;  %v1066_v63 = vpop.f32.mrb[8].mxu1 }
 0x109   :  { %v585_v0 = vmax.f32 %v1064_v62, %v1066_v63  ;;  %v205_v1 = vpop.f32.mrb[9].mxu0  ;;  %v326_v2 = vpop.f32.mrb[9].mxu1 }
 0x10a   :  { %v1070_v3 = vpop.f32.mrb[10].mxu0  ;;  %v1072_v4 = vpop.f32.mrb[10].mxu1 }
 0x10b   :  { %v586_v5 = vmax.f32 %v1070_v3, %v1072_v4  ;;  %v208_v6 = vpop.f32.mrb[11].mxu0  ;;  %v329_v7 = vpop.f32.mrb[11].mxu1 }
 0x110   :  { %v1076_v8 = vpop.f32.mrb[12].mxu0  ;;  %v1078_v9 = vpop.f32.mrb[12].mxu1 }
 0x111   :  { %v587_v10 = vmax.f32 %v1076_v8, %v1078_v9  ;;  %v213_v11 = vpop.f32.mrb[13].mxu0  ;;  %v334_v12 = vpop.f32.mrb[13].mxu1 }
 0x112   :  { %v1082_v13 = vpop.f32.mrb[14].mxu0  ;;  %v1084_v14 = vpop.f32.mrb[14].mxu1 }
 0x113   :  { %v588_v15 = vmax.f32 %v1082_v13, %v1084_v14  ;;  %v216_v16 = vpop.f32.mrb[15].mxu0  ;;  %v337_v17 = vpop.f32.mrb[15].mxu1 }
 0x11c   :  { %v429_v18 = vpop.f32.mrb[16].mxu0  ;;  %v550_v19 = vpop.f32.mrb[16].mxu1 }
 0x11d   :  { %v589_v20 = vmax.f32 %v429_v18, %v550_v19  ;;  %v431_v21 = vpop.f32.mrb[17].mxu0  ;;  %v552_v22 = vpop.f32.mrb[17].mxu1 }
 0x11e   :  { %v432_v24 = vpop.f32.mrb[18].mxu0  ;;  %v553_v25 = vpop.f32.mrb[18].mxu1 }
 0x11f   :  { %v597_v26 = vmax.f32 %v581_v44, %v589_v20  ;;  %v590_v27 = vmax.f32 %v432_v24, %v553_v25  ;;  %v434_v28 = vpop.f32.mrb[19].mxu0  ;;  %v555_v29 = vpop.f32.mrb[19].mxu1 }
 0x121   :  { %v612_v30 = vadd.f32 %v1091_v23, %v597_v26  ;;  %v598_v31 = vmax.f32 %v582_v49, %v590_v27 }
 0x123   :  { %v620_v32 = vmax.f32 %v612_v30, 0.0  ;;  %v613_v33 = vadd.f32 %v1091_v23, %v598_v31 }
 0x124   :  { %v437_v34 = vpop.f32.mrb[20].mxu0  ;;  %v558_v35 = vpop.f32.mrb[20].mxu1 }
 0x125   :  { %v739_v36 = vpack.c.bf16 %v620_v32, %v620_v32  ;;  %v621_v37 = vmax.f32 %v613_v33, 0.0  ;;  %v591_v38 = vmax.f32 %v437_v34, %v558_v35  ;;  %v439_v39 = vpop.f32.mrb[21].mxu0  ;;  %v560_v40 = vpop.f32.mrb[21].mxu1 }
 0x126   :  { %v440_v41 = vpop.f32.mrb[22].mxu0  ;;  %v561_v42 = vpop.f32.mrb[22].mxu1 }
 0x127   :  { %661 = vst.msk [vmem:[%s1151_s6] sm:$0xf] %vm660_vm1, %v739_v36  ;;  %v740_v43 = vpack.c.bf16 %v621_v37, %v621_v37  ;;  %v599_v44 = vmax.f32 %v583_v54, %v591_v38  ;;  %v592_v45 = vmax.f32 %v440_v41, %v561_v42  ;;  %v442_v46 = vpop.f32.mrb[23].mxu0  ;;  %v563_v47 = vpop.f32.mrb[23].mxu1 }
 0x129   :  { %662 = vst.msk [vmem:[%s1151_s6 + $0x4] sm:$0xf] %vm660_vm1, %v740_v43  ;;  %v614_v48 = vadd.f32 %v1091_v23, %v599_v44  ;;  %v600_v49 = vmax.f32 %v584_v59, %v592_v45 }
 0x12b   :  { %v622_v50 = vmax.f32 %v614_v48, 0.0  ;;  %v615_v51 = vadd.f32 %v1091_v23, %v600_v49 }
 0x12c   :  { %v445_v52 = vpop.f32.mrb[24].mxu0  ;;  %v566_v53 = vpop.f32.mrb[24].mxu1 }
 0x12d   :  { %v741_v55 = vpack.c.bf16 %v622_v50, %v622_v50  ;;  %v623_v56 = vmax.f32 %v615_v51, 0.0  ;;  %v593_v57 = vmax.f32 %v445_v52, %v566_v53  ;;  %v447_v54 = vpop.f32.mrb[25].mxu0  ;;  %v568_v58 = vpop.f32.mrb[25].mxu1 }
 0x12e   :  { %v448_v60 = vpop.f32.mrb[26].mxu0  ;;  %v569_v61 = vpop.f32.mrb[26].mxu1 }
 0x12f   :  { %663 = vst.msk [vmem:[%s1151_s6 + $0x8] sm:$0xf] %vm660_vm1, %v741_v55  ;;  %v742_v1 = vpack.c.bf16 %v623_v56, %v623_v56  ;;  %v601_v59 = vmax.f32 %v585_v0, %v593_v57  ;;  %v594_v2 = vmax.f32 %v448_v60, %v569_v61  ;;  %v450_v6 = vpop.f32.mrb[27].mxu0  ;;  %v571_v7 = vpop.f32.mrb[27].mxu1 }
 0x131   :  { %664 = vst.msk [vmem:[%s1151_s6 + $0xc] sm:$0xf] %vm660_vm1, %v742_v1  ;;  %v616_v11 = vadd.f32 %v1091_v23, %v601_v59  ;;  %v602_v12 = vmax.f32 %v586_v5, %v594_v2 }
 0x133   :  { %v624_v16 = vmax.f32 %v616_v11, 0.0  ;;  %v617_v17 = vadd.f32 %v1091_v23, %v602_v12 }
 0x134   :  { %v453_v18 = vpop.f32.mrb[28].mxu0  ;;  %v574_v62 = vpop.f32.mrb[28].mxu1 }
 0x135   :  { %v743_v63 = vpack.c.bf16 %v624_v16, %v624_v16  ;;  %v625_v0 = vmax.f32 %v617_v17, 0.0  ;;  %v595_v19 = vmax.f32 %v453_v18, %v574_v62  ;;  %v455_v20 = vpop.f32.mrb[29].mxu0  ;;  %v576_v21 = vpop.f32.mrb[29].mxu1 }
 0x136   :  { %v456_v22 = vpop.f32.mrb[30].mxu0  ;;  %v577_v24 = vpop.f32.mrb[30].mxu1 }
 0x137   :  { %665 = vst.msk [vmem:[%s1151_s6 + $0x10] sm:$0xf] %vm660_vm1, %v743_v63  ;;  %v744_v25 = vpack.c.bf16 %v625_v0, %v625_v0  ;;  %v603_v3 = vmax.f32 %v587_v10, %v595_v19  ;;  %v596_v4 = vmax.f32 %v456_v22, %v577_v24  ;;  %v458_v5 = vpop.f32.mrb[31].mxu0  ;;  %v579_v26 = vpop.f32.mrb[31].mxu1 }
 0x139   :  { %666 = vst.msk [vmem:[%s1151_s6 + $0x14] sm:$0xf] %vm660_vm1, %v744_v25  ;;  %v618_v27 = vadd.f32 %v1091_v23, %v603_v3  ;;  %v604_v28 = vmax.f32 %v588_v15, %v596_v4 }
 0x13b   :  { %v626_v29 = vmax.f32 %v618_v27, 0.0  ;;  %v619_v30 = vadd.f32 %v1091_v23, %v604_v28 }
 0x13d   :  { %v745_v31 = vpack.c.bf16 %v626_v29, %v626_v29  ;;  %v627_v8 = vmax.f32 %v619_v30, 0.0 }
 0x13f   :  { %667 = vst.msk [vmem:[%s1151_s6 + $0x18] sm:$0xf] %vm660_vm1, %v745_v31  ;;  %v746_v9 = vpack.c.bf16 %v627_v8, %v627_v8 }
 0x141   :  { %668 = vst.msk [vmem:[%s1151_s6 + $0x1c] sm:$0xf] %vm660_vm1, %v746_v9 }

// kernel: cnn_forward.5
= control target key start
LH: loop header
LB: loop body
LE: loop exit
PB: predicated region body
PF: predicated region fallthrough
CT: control target
= control target key end

     0   :  { %vm1286_vm0 = vcmask 261120   ;;  %vm1991_vm1 = vcmask 80896   ;;  %s3419_s1 = inlined_call_operand.vmem [shape: bf16[800,512], index: 1, kind: input, shape index: {}]   ;;  %s3420_s0 = inlined_call_operand.vmem [shape: bf16[16,800], index: 0, kind: input, shape index: {}]   ;;  %s3421_s3 = inlined_call_operand.vmem [shape: bf16[512,10], index: 3, kind: input, shape index: {}]   ;;  %s3422_s2 = inlined_call_operand.vmem [shape: f32[1,512], index: 2, kind: input, shape index: {}]   ;;  %s3423_s4 = inlined_call_operand.vmem [shape: f32[1,10], index: 4, kind: input, shape index: {}]   ;;  %s3424_s5 = inlined_call_operand.vmem [shape: f32[16,10], index: 5, kind: output, shape index: {}]  }
   0x1   :  { %v2317_v0 = vld [vmem:[%s3419_s1 + $0x4] ss:$16 sps:$4 sm:$0xff]   ;;  %v2319_v1 = vld [vmem:[%s3419_s1 + $0xc] ss:$16 sps:$4 sm:$0xff]   ;;  %v2321_v2 = vld [vmem:[%s3419_s1] ss:$16 sps:$4 sm:$0xff]  }
   0x2   :  { %1290 = vmatprep.subr.bf16.mxu0 %v2317_v0  ;;  %v2322_v3 = vld [vmem:[%s3419_s1 + $0x8] ss:$16 sps:$4 sm:$0xff]   ;;  %1462 = vmatprep.subr.bf16.mxu1 %v2319_v1  ;;  %v2323_v4 = vld [vmem:[%s3419_s1 + $0x24] ss:$16 sps:$4 sm:$0xff]   ;;  %v2325_v5 = vld [vmem:[%s3419_s1 + $0x2c] ss:$16 sps:$4 sm:$0xff]  }
   0x3   :  { %1291 = vmatpush1.bf16.msra.mxu0 %v2321_v2  ;;  %1463 = vmatpush1.bf16.msra.mxu1 %v2322_v3  ;;  %v2327_v6 = vld [vmem:[%s3419_s1 + $0x20] ss:$16 sps:$4 sm:$0xff]   ;;  %v2328_v7 = vld [vmem:[%s3419_s1 + $0x28] ss:$16 sps:$4 sm:$0xff]   ;;  %v2329_v8 = vld [vmem:[%s3419_s1 + $0x44] ss:$16 sps:$4 sm:$0xff]  }
   0x4   :  { %1292 = vmatprep.subr.bf16.mxu0 %v2323_v4  ;;  %1464 = vmatprep.subr.bf16.mxu1 %v2325_v5  ;;  %v2331_v9 = vld [vmem:[%s3419_s1 + $0x4c] ss:$16 sps:$4 sm:$0xff]   ;;  %v2333_v10 = vld [vmem:[%s3419_s1 + $0x40] ss:$16 sps:$4 sm:$0xff]   ;;  %v2334_v11 = vld [vmem:[%s3419_s1 + $0x48] ss:$16 sps:$4 sm:$0xff]  }
   0x5   :  { %v2335_v12 = vld [vmem:[%s3419_s1 + $0x64] ss:$16 sps:$4 sm:$0xff]   ;;  %v2337_v13 = vld [vmem:[%s3419_s1 + $0x6c] ss:$16 sps:$4 sm:$0xff]   ;;  %v2339_v14 = vld [vmem:[%s3419_s1 + $0x60] ss:$16 sps:$4 sm:$0xff]  }
   0x6   :  { %v2340_v15 = vld [vmem:[%s3419_s1 + $0x68] ss:$16 sps:$4 sm:$0xff]   ;;  %v2341_v16 = vld [vmem:[%s3419_s1 + $0x84] ss:$16 sps:$4 sm:$0xff]   ;;  %v2343_v17 = vld [vmem:[%s3419_s1 + $0x8c] ss:$16 sps:$4 sm:$0xff]  }
   0x7   :  { %1293 = vmatpush1.bf16.msra.mxu0 %v2327_v6  ;;  %1465 = vmatpush1.bf16.msra.mxu1 %v2328_v7  ;;  %v2345_v18 = vld [vmem:[%s3419_s1 + $0x80] ss:$16 sps:$4 sm:$0xff]   ;;  %v2346_v19 = vld [vmem:[%s3419_s1 + $0x88] ss:$16 sps:$4 sm:$0xff]   ;;  %v2347_v20 = vld [vmem:[%s3419_s1 + $0xa4] ss:$16 sps:$4 sm:$0xff]  }
   0x8   :  { %1294 = vmatprep.subr.bf16.mxu0 %v2329_v8  ;;  %1466 = vmatprep.subr.bf16.mxu1 %v2331_v9  ;;  %v2349_v21 = vld [vmem:[%s3419_s1 + $0xac] ss:$16 sps:$4 sm:$0xff]   ;;  %v2351_v22 = vld [vmem:[%s3419_s1 + $0xa0] ss:$16 sps:$4 sm:$0xff]   ;;  %v2352_v23 = vld [vmem:[%s3419_s1 + $0xa8] ss:$16 sps:$4 sm:$0xff]  }
   0x9   :  { %v2353_v24 = vld [vmem:[%s3419_s1 + $0xc4] ss:$16 sps:$4 sm:$0xff]   ;;  %v2355_v25 = vld [vmem:[%s3419_s1 + $0xcc] ss:$16 sps:$4 sm:$0xff]   ;;  %v2357_v26 = vld [vmem:[%s3419_s1 + $0xc0] ss:$16 sps:$4 sm:$0xff]  }
   0xa   :  { %v2358_v27 = vld [vmem:[%s3419_s1 + $0xc8] ss:$16 sps:$4 sm:$0xff]   ;;  %v2359_v28 = vld [vmem:[%s3419_s1 + $0xe4] ss:$16 sps:$4 sm:$0xff]   ;;  %v2361_v29 = vld [vmem:[%s3419_s1 + $0xec] ss:$16 sps:$4 sm:$0xff]  }
   0xb   :  { %1295 = vmatpush1.bf16.msra.mxu0 %v2333_v10  ;;  %1467 = vmatpush1.bf16.msra.mxu1 %v2334_v11  ;;  %v2363_v30 = vld [vmem:[%s3419_s1 + $0xe0] ss:$16 sps:$4 sm:$0xff]   ;;  %v2364_v31 = vld [vmem:[%s3419_s1 + $0xe8] ss:$16 sps:$4 sm:$0xff]   ;;  %v2365_v32 = vld [vmem:[%s3419_s1 + $0x104] ss:$16 sps:$4 sm:$0xff]  }
   0xc   :  { %1296 = vmatprep.subr.bf16.mxu0 %v2335_v12  ;;  %1468 = vmatprep.subr.bf16.mxu1 %v2337_v13  ;;  %v2367_v33 = vld [vmem:[%s3419_s1 + $0x10c] ss:$16 sps:$4 sm:$0xff]   ;;  %v2369_v34 = vld [vmem:[%s3419_s1 + $0x100] ss:$16 sps:$4 sm:$0xff]   ;;  %v2370_v35 = vld [vmem:[%s3419_s1 + $0x108] ss:$16 sps:$4 sm:$0xff]  }
   0xd   :  { %v2371_v36 = vld [vmem:[%s3419_s1 + $0x124] ss:$16 sps:$4 sm:$0xff]   ;;  %v2373_v37 = vld [vmem:[%s3419_s1 + $0x12c] ss:$16 sps:$4 sm:$0xff]   ;;  %v2375_v38 = vld [vmem:[%s3419_s1 + $0x120] ss:$16 sps:$4 sm:$0xff]  }
   0xe   :  { %v2376_v39 = vld [vmem:[%s3419_s1 + $0x128] ss:$16 sps:$4 sm:$0xff]   ;;  %v2377_v40 = vld [vmem:[%s3419_s1 + $0x144] ss:$16 sps:$4 sm:$0xff]   ;;  %v2379_v41 = vld [vmem:[%s3419_s1 + $0x14c] ss:$16 sps:$4 sm:$0xff]  }
   0xf   :  { %1297 = vmatpush1.bf16.msra.mxu0 %v2339_v14  ;;  %1469 = vmatpush1.bf16.msra.mxu1 %v2340_v15  ;;  %v2381_v42 = vld [vmem:[%s3419_s1 + $0x140] ss:$16 sps:$4 sm:$0xff]   ;;  %v2382_v43 = vld [vmem:[%s3419_s1 + $0x148] ss:$16 sps:$4 sm:$0xff]   ;;  %v2383_v44 = vld [vmem:[%s3419_s1 + $0x164] ss:$16 sps:$4 sm:$0xff]  }
  0x10   :  { %1298 = vmatprep.subr.bf16.mxu0 %v2341_v16  ;;  %1470 = vmatprep.subr.bf16.mxu1 %v2343_v17  ;;  %v2385_v45 = vld [vmem:[%s3419_s1 + $0x16c] ss:$16 sps:$4 sm:$0xff]   ;;  %v2387_v46 = vld [vmem:[%s3419_s1 + $0x160] ss:$16 sps:$4 sm:$0xff]   ;;  %v2388_v47 = vld [vmem:[%s3419_s1 + $0x168] ss:$16 sps:$4 sm:$0xff]  }
  0x11   :  { %v2415_v48 = vld [vmem:[%s3420_s0 + $0x4] ss:$28 sps:$4 sm:$0xff]   ;;  %v2391_v50 = vld [vmem:[%s3419_s1 + $0x18c] ss:$16 sps:$4 sm:$0xff]   ;;  %v2394_v52 = vld [vmem:[%s3419_s1 + $0x188] ss:$16 sps:$4 sm:$0xff]  }
  0x12   :  { %v2389_v49 = vld [vmem:[%s3419_s1 + $0x184] ss:$16 sps:$4 sm:$0xff]   ;;  %1322 = vmatprep.mubr.bf16.mxu0 %v2415_v48  ;;  %1494 = vmatprep.mubr.bf16.mxu1 %v2415_v48  ;;  %v2393_v51 = vld [vmem:[%s3419_s1 + $0x180] ss:$16 sps:$4 sm:$0xff]   ;;  %v2397_v54 = vld [vmem:[%s3419_s1 + $0x1ac] ss:$16 sps:$4 sm:$0xff]  }
  0x13   :  { %1299 = vmatpush1.bf16.msra.mxu0 %v2345_v18  ;;  %1471 = vmatpush1.bf16.msra.mxu1 %v2346_v19  ;;  %v2395_v53 = vld [vmem:[%s3419_s1 + $0x1a4] ss:$16 sps:$4 sm:$0xff]   ;;  %v2399_v55 = vld [vmem:[%s3419_s1 + $0x1a0] ss:$16 sps:$4 sm:$0xff]   ;;  %v2400_v56 = vld [vmem:[%s3419_s1 + $0x1a8] ss:$16 sps:$4 sm:$0xff]  }
  0x14   :  { %1300 = vmatprep.subr.bf16.mxu0 %v2347_v20  ;;  %1472 = vmatprep.subr.bf16.mxu1 %v2349_v21  ;;  %v2401_v57 = vld [vmem:[%s3419_s1 + $0x1c4] ss:$16 sps:$4 sm:$0xff]   ;;  %v2403_v58 = vld [vmem:[%s3419_s1 + $0x1cc] ss:$16 sps:$4 sm:$0xff]   ;;  %v2405_v59 = vld [vmem:[%s3419_s1 + $0x1c0] ss:$16 sps:$4 sm:$0xff]  }
  0x15   :  { %v2406_v60 = vld [vmem:[%s3419_s1 + $0x1c8] ss:$16 sps:$4 sm:$0xff]   ;;  %v2407_v61 = vld [vmem:[%s3419_s1 + $0x1e4] ss:$16 sps:$4 sm:$0xff]   ;;  %v2409_v62 = vld [vmem:[%s3419_s1 + $0x1ec] ss:$16 sps:$4 sm:$0xff]  }
  0x16   :  { %v2411_v63 = vld [vmem:[%s3419_s1 + $0x1e0] ss:$16 sps:$4 sm:$0xff]   ;;  %v2412_v0 = vld [vmem:[%s3419_s1 + $0x1e8] ss:$16 sps:$4 sm:$0xff]   ;;  %v2418_v1 = vld [vmem:[%s3419_s1 + $0x204] ss:$16 sps:$4 sm:$0xff]  }
  0x17   :  { %1301 = vmatpush1.bf16.msra.mxu0 %v2351_v22  ;;  %1473 = vmatpush1.bf16.msra.mxu1 %v2352_v23  ;;  %v2421_v2 = vld [vmem:[%s3419_s1 + $0x20c] ss:$16 sps:$4 sm:$0xff]   ;;  %v2416_v4 = vld [vmem:[%s3419_s1 + $0x200] ss:$16 sps:$4 sm:$0xff]   ;;  %v2419_v5 = vld [vmem:[%s3419_s1 + $0x208] ss:$16 sps:$4 sm:$0xff]  }
  0x18   :  { %1302 = vmatprep.subr.bf16.mxu0 %v2353_v24  ;;  %1474 = vmatprep.subr.bf16.mxu1 %v2355_v25  ;;  %v2413_v3 = vld [vmem:[%s3420_s0] ss:$28 sps:$4 sm:$0xff]   ;;  %v2424_v6 = vld [vmem:[%s3419_s1 + $0x224] ss:$16 sps:$4 sm:$0xff]   ;;  %v2425_v9 = vld [vmem:[%s3419_s1 + $0x228] ss:$16 sps:$4 sm:$0xff]  }
  0x19   :  { %v2427_v7 = vld [vmem:[%s3419_s1 + $0x22c] ss:$16 sps:$4 sm:$0xff]   ;;  %v2422_v8 = vld [vmem:[%s3419_s1 + $0x220] ss:$16 sps:$4 sm:$0xff]   ;;  %v2430_v10 = vld [vmem:[%s3419_s1 + $0x244] ss:$16 sps:$4 sm:$0xff]  }
  0x1a   :  { %v2433_v11 = vld [vmem:[%s3419_s1 + $0x24c] ss:$16 sps:$4 sm:$0xff]   ;;  %v2428_v12 = vld [vmem:[%s3419_s1 + $0x240] ss:$16 sps:$4 sm:$0xff]   ;;  %v2431_v13 = vld [vmem:[%s3419_s1 + $0x248] ss:$16 sps:$4 sm:$0xff]  }
  0x1b   :  { %1303 = vmatpush1.bf16.msra.mxu0 %v2357_v26  ;;  %1475 = vmatpush1.bf16.msra.mxu1 %v2358_v27  ;;  %v2436_v14 = vld [vmem:[%s3419_s1 + $0x264] ss:$16 sps:$4 sm:$0xff]   ;;  %v2439_v15 = vld [vmem:[%s3419_s1 + $0x26c] ss:$16 sps:$4 sm:$0xff]   ;;  %v2434_v16 = vld [vmem:[%s3419_s1 + $0x260] ss:$16 sps:$4 sm:$0xff]  }
  0x1c   :  { %1304 = vmatprep.subr.bf16.mxu0 %v2359_v28  ;;  %1476 = vmatprep.subr.bf16.mxu1 %v2361_v29  ;;  %v2437_v17 = vld [vmem:[%s3419_s1 + $0x268] ss:$16 sps:$4 sm:$0xff]   ;;  %v2442_v18 = vld [vmem:[%s3419_s1 + $0x284] ss:$16 sps:$4 sm:$0xff]   ;;  %v2445_v19 = vld [vmem:[%s3419_s1 + $0x28c] ss:$16 sps:$4 sm:$0xff]  }
  0x1d   :  { %v2440_v20 = vld [vmem:[%s3419_s1 + $0x280] ss:$16 sps:$4 sm:$0xff]   ;;  %v2443_v21 = vld [vmem:[%s3419_s1 + $0x288] ss:$16 sps:$4 sm:$0xff]   ;;  %v2448_v22 = vld [vmem:[%s3419_s1 + $0x2a4] ss:$16 sps:$4 sm:$0xff]  }
  0x1e   :  { %v2451_v23 = vld [vmem:[%s3419_s1 + $0x2ac] ss:$16 sps:$4 sm:$0xff]   ;;  %v2446_v24 = vld [vmem:[%s3419_s1 + $0x2a0] ss:$16 sps:$4 sm:$0xff]   ;;  %v2449_v25 = vld [vmem:[%s3419_s1 + $0x2a8] ss:$16 sps:$4 sm:$0xff]  }
  0x1f   :  { %1305 = vmatpush1.bf16.msra.mxu0 %v2363_v30  ;;  %1477 = vmatpush1.bf16.msra.mxu1 %v2364_v31  ;;  %v2454_v26 = vld [vmem:[%s3419_s1 + $0x2c4] ss:$16 sps:$4 sm:$0xff]   ;;  %v2457_v27 = vld [vmem:[%s3419_s1 + $0x2cc] ss:$16 sps:$4 sm:$0xff]   ;;  %v2452_v28 = vld [vmem:[%s3419_s1 + $0x2c0] ss:$16 sps:$4 sm:$0xff]  }
  0x20   :  { %1306 = vmatprep.subr.bf16.mxu0 %v2365_v32  ;;  %1478 = vmatprep.subr.bf16.mxu1 %v2367_v33  ;;  %v2455_v29 = vld [vmem:[%s3419_s1 + $0x2c8] ss:$16 sps:$4 sm:$0xff]   ;;  %v2460_v31 = vld [vmem:[%s3419_s1 + $0x2e4] ss:$16 sps:$4 sm:$0xff]   ;;  %v2463_v32 = vld [vmem:[%s3419_s1 + $0x2ec] ss:$16 sps:$4 sm:$0xff]  }
  0x21   :  { %v2514_v30 = vld [vmem:[%s3420_s0 + $0xc] ss:$28 sps:$4 sm:$0xff]   ;;  %v2458_v33 = vld [vmem:[%s3419_s1 + $0x2e0] ss:$16 sps:$4 sm:$0xff]  }
  0x22   :  { %v2487_v48 = vld [vmem:[%s3419_s1 + $0x36c] ss:$16 sps:$4 sm:$0xff]  }
  0x23   :  { %1307 = vmatpush1.bf16.msra.mxu0 %v2369_v34  ;;  %1479 = vmatpush1.bf16.msra.mxu1 %v2370_v35  ;;  %v2461_v34 = vld [vmem:[%s3419_s1 + $0x2e8] ss:$16 sps:$4 sm:$0xff]   ;;  %v2466_v35 = vld [vmem:[%s3419_s1 + $0x304] ss:$16 sps:$4 sm:$0xff]  }
  0x24   :  { %1308 = vmatprep.subr.bf16.mxu0 %v2371_v36  ;;  %1480 = vmatprep.subr.bf16.mxu1 %v2373_v37  ;;  %v2469_v36 = vld [vmem:[%s3419_s1 + $0x30c] ss:$16 sps:$4 sm:$0xff]   ;;  %v2464_v37 = vld [vmem:[%s3419_s1 + $0x300] ss:$16 sps:$4 sm:$0xff]  }
  0x27   :  { %1309 = vmatpush1.bf16.msra.mxu0 %v2375_v38  ;;  %1481 = vmatpush1.bf16.msra.mxu1 %v2376_v39  ;;  %v2467_v38 = vld [vmem:[%s3419_s1 + $0x308] ss:$16 sps:$4 sm:$0xff]   ;;  %v2472_v39 = vld [vmem:[%s3419_s1 + $0x324] ss:$16 sps:$4 sm:$0xff]  }
  0x28   :  { %1310 = vmatprep.subr.bf16.mxu0 %v2377_v40  ;;  %1482 = vmatprep.subr.bf16.mxu1 %v2379_v41  ;;  %v2475_v40 = vld [vmem:[%s3419_s1 + $0x32c] ss:$16 sps:$4 sm:$0xff]   ;;  %v2470_v41 = vld [vmem:[%s3419_s1 + $0x320] ss:$16 sps:$4 sm:$0xff]  }
  0x2b   :  { %1311 = vmatpush1.bf16.msra.mxu0 %v2381_v42  ;;  %1483 = vmatpush1.bf16.msra.mxu1 %v2382_v43  ;;  %v2473_v42 = vld [vmem:[%s3419_s1 + $0x328] ss:$16 sps:$4 sm:$0xff]   ;;  %v2478_v43 = vld [vmem:[%s3419_s1 + $0x344] ss:$16 sps:$4 sm:$0xff]  }
  0x2c   :  { %1312 = vmatprep.subr.bf16.mxu0 %v2383_v44  ;;  %1484 = vmatprep.subr.bf16.mxu1 %v2385_v45  ;;  %v2481_v44 = vld [vmem:[%s3419_s1 + $0x34c] ss:$16 sps:$4 sm:$0xff]   ;;  %v2476_v45 = vld [vmem:[%s3419_s1 + $0x340] ss:$16 sps:$4 sm:$0xff]  }
  0x2f   :  { %1313 = vmatpush1.bf16.msra.mxu0 %v2387_v46  ;;  %1485 = vmatpush1.bf16.msra.mxu1 %v2388_v47  ;;  %v2479_v46 = vld [vmem:[%s3419_s1 + $0x348] ss:$16 sps:$4 sm:$0xff]   ;;  %v2484_v47 = vld [vmem:[%s3419_s1 + $0x364] ss:$16 sps:$4 sm:$0xff]  }
  0x30   :  { %1314 = vmatprep.subr.bf16.mxu0 %v2389_v49  ;;  %1486 = vmatprep.subr.bf16.mxu1 %v2391_v50  ;;  %v2482_v49 = vld [vmem:[%s3419_s1 + $0x360] ss:$16 sps:$4 sm:$0xff]   ;;  %v2485_v50 = vld [vmem:[%s3419_s1 + $0x368] ss:$16 sps:$4 sm:$0xff]  }
  0x33   :  { %1315 = vmatpush1.bf16.msra.mxu0 %v2393_v51  ;;  %1487 = vmatpush1.bf16.msra.mxu1 %v2394_v52  ;;  %v2490_v51 = vld [vmem:[%s3419_s1 + $0x384] ss:$16 sps:$4 sm:$0xff]   ;;  %v2493_v52 = vld [vmem:[%s3419_s1 + $0x38c] ss:$16 sps:$4 sm:$0xff]  }
  0x34   :  { %1316 = vmatprep.subr.bf16.mxu0 %v2395_v53  ;;  %1488 = vmatprep.subr.bf16.mxu1 %v2397_v54  ;;  %v2488_v53 = vld [vmem:[%s3419_s1 + $0x380] ss:$16 sps:$4 sm:$0xff]   ;;  %v2491_v54 = vld [vmem:[%s3419_s1 + $0x388] ss:$16 sps:$4 sm:$0xff]  }
  0x37   :  { %1317 = vmatpush1.bf16.msra.mxu0 %v2399_v55  ;;  %1489 = vmatpush1.bf16.msra.mxu1 %v2400_v56  ;;  %v2496_v55 = vld [vmem:[%s3419_s1 + $0x3a4] ss:$16 sps:$4 sm:$0xff]   ;;  %v2499_v56 = vld [vmem:[%s3419_s1 + $0x3ac] ss:$16 sps:$4 sm:$0xff]  }
  0x38   :  { %1318 = vmatprep.subr.bf16.mxu0 %v2401_v57  ;;  %1490 = vmatprep.subr.bf16.mxu1 %v2403_v58  ;;  %v2494_v57 = vld [vmem:[%s3419_s1 + $0x3a0] ss:$16 sps:$4 sm:$0xff]   ;;  %v2497_v58 = vld [vmem:[%s3419_s1 + $0x3a8] ss:$16 sps:$4 sm:$0xff]  }
  0x3b   :  { %1319 = vmatpush1.bf16.msra.mxu0 %v2405_v59  ;;  %1491 = vmatpush1.bf16.msra.mxu1 %v2406_v60  ;;  %v2502_v59 = vld [vmem:[%s3419_s1 + $0x3c4] ss:$16 sps:$4 sm:$0xff]   ;;  %v2505_v60 = vld [vmem:[%s3419_s1 + $0x3cc] ss:$16 sps:$4 sm:$0xff]  }
  0x3c   :  { %1320 = vmatprep.subr.bf16.mxu0 %v2407_v61  ;;  %1492 = vmatprep.subr.bf16.mxu1 %v2409_v62  ;;  %v2500_v61 = vld [vmem:[%s3419_s1 + $0x3c0] ss:$16 sps:$4 sm:$0xff]   ;;  %v2503_v62 = vld [vmem:[%s3419_s1 + $0x3c8] ss:$16 sps:$4 sm:$0xff]  }
  0x3f   :  { %1321 = vmatpush1.bf16.msra.mxu0 %v2411_v63  ;;  %1493 = vmatpush1.bf16.msra.mxu1 %v2412_v0  ;;  %v2508_v63 = vld [vmem:[%s3419_s1 + $0x3e4] ss:$16 sps:$4 sm:$0xff]   ;;  %v2511_v0 = vld [vmem:[%s3419_s1 + $0x3ec] ss:$16 sps:$4 sm:$0xff]  }
  0x40   :  { %1333 = vmatprep.subr.bf16.mxu0 %v2418_v1  ;;  %1505 = vmatprep.subr.bf16.mxu1 %v2421_v2  ;;  %v2506_v1 = vld [vmem:[%s3419_s1 + $0x3e0] ss:$16 sps:$4 sm:$0xff]   ;;  %v2509_v2 = vld [vmem:[%s3419_s1 + $0x3e8] ss:$16 sps:$4 sm:$0xff]  }
  0x42   :  { %1323 = vmatmul.mubr.bf16.vlgmr.msra.gmra.mrb[0].mxu0 %v2413_v3  ;;  %1495 = vmatmul.mubr.bf16.vlgmr.msra.gmra.mrb[0].mxu1 %v2413_v3  ;;  %v2517_v3 = vld [vmem:[%s3419_s1 + $0x404] ss:$16 sps:$4 sm:$0xff]  }
  0x43   :  { %1334 = vmatpush1.bf16.msra.mxu0 %v2416_v4  ;;  %1506 = vmatpush1.bf16.msra.mxu1 %v2419_v5  ;;  %v2520_v4 = vld [vmem:[%s3419_s1 + $0x40c] ss:$16 sps:$4 sm:$0xff]   ;;  %v2512_v5 = vld [vmem:[%s3420_s0 + $0x8] ss:$28 sps:$4 sm:$0xff]  }
  0x44   :  { %1335 = vmatprep.subr.bf16.mxu0 %v2424_v6  ;;  %1507 = vmatprep.subr.bf16.mxu1 %v2427_v7  ;;  %v2515_v6 = vld [vmem:[%s3419_s1 + $0x400] ss:$16 sps:$4 sm:$0xff]   ;;  %v2518_v7 = vld [vmem:[%s3419_s1 + $0x408] ss:$16 sps:$4 sm:$0xff]  }
  0x45   :  { %1365 = vmatprep.mubr.bf16.mxu0 %v2514_v30  ;;  %1537 = vmatprep.mubr.bf16.mxu1 %v2514_v30  ;;  %v2556_v30 = vld [vmem:[%s3419_s1 + $0x4cc] ss:$16 sps:$4 sm:$0xff]  }
  0x47   :  { %1336 = vmatpush1.bf16.msra.mxu0 %v2422_v8  ;;  %1508 = vmatpush1.bf16.msra.mxu1 %v2425_v9  ;;  %v2523_v8 = vld [vmem:[%s3419_s1 + $0x424] ss:$16 sps:$4 sm:$0xff]   ;;  %v2526_v9 = vld [vmem:[%s3419_s1 + $0x42c] ss:$16 sps:$4 sm:$0xff]  }
  0x48   :  { %1337 = vmatprep.subr.bf16.mxu0 %v2430_v10  ;;  %1509 = vmatprep.subr.bf16.mxu1 %v2433_v11  ;;  %v2521_v10 = vld [vmem:[%s3419_s1 + $0x420] ss:$16 sps:$4 sm:$0xff]   ;;  %v2524_v11 = vld [vmem:[%s3419_s1 + $0x428] ss:$16 sps:$4 sm:$0xff]  }
  0x4b   :  { %1338 = vmatpush1.bf16.msra.mxu0 %v2428_v12  ;;  %1510 = vmatpush1.bf16.msra.mxu1 %v2431_v13  ;;  %v2613_v12 = vld [vmem:[%s3420_s0 + $0x14] ss:$28 sps:$4 sm:$0xff]  }
  0x4c   :  { %1339 = vmatprep.subr.bf16.mxu0 %v2436_v14  ;;  %1511 = vmatprep.subr.bf16.mxu1 %v2439_v15  ;;  %v2529_v13 = vld [vmem:[%s3419_s1 + $0x444] ss:$16 sps:$4 sm:$0xff]   ;;  %v2532_v14 = vld [vmem:[%s3419_s1 + $0x44c] ss:$16 sps:$4 sm:$0xff]   ;;  %v2527_v15 = vld [vmem:[%s3419_s1 + $0x440] ss:$16 sps:$4 sm:$0xff]  }
  0x4f   :  { %1340 = vmatpush1.bf16.msra.mxu0 %v2434_v16  ;;  %1512 = vmatpush1.bf16.msra.mxu1 %v2437_v17  ;;  %v2530_v16 = vld [vmem:[%s3419_s1 + $0x448] ss:$16 sps:$4 sm:$0xff]   ;;  %v2535_v17 = vld [vmem:[%s3419_s1 + $0x464] ss:$16 sps:$4 sm:$0xff]  }
  0x50   :  { %1341 = vmatprep.subr.bf16.mxu0 %v2442_v18  ;;  %1513 = vmatprep.subr.bf16.mxu1 %v2445_v19  ;;  %v2538_v18 = vld [vmem:[%s3419_s1 + $0x46c] ss:$16 sps:$4 sm:$0xff]   ;;  %v2533_v19 = vld [vmem:[%s3419_s1 + $0x460] ss:$16 sps:$4 sm:$0xff]  }
  0x53   :  { %1342 = vmatpush1.bf16.msra.mxu0 %v2440_v20  ;;  %1514 = vmatpush1.bf16.msra.mxu1 %v2443_v21  ;;  %v2536_v20 = vld [vmem:[%s3419_s1 + $0x468] ss:$16 sps:$4 sm:$0xff]   ;;  %v2541_v21 = vld [vmem:[%s3419_s1 + $0x484] ss:$16 sps:$4 sm:$0xff]  }
  0x54   :  { %1343 = vmatprep.subr.bf16.mxu0 %v2448_v22  ;;  %1515 = vmatprep.subr.bf16.mxu1 %v2451_v23  ;;  %v2544_v22 = vld [vmem:[%s3419_s1 + $0x48c] ss:$16 sps:$4 sm:$0xff]   ;;  %v2539_v23 = vld [vmem:[%s3419_s1 + $0x480] ss:$16 sps:$4 sm:$0xff]  }
  0x57   :  { %1344 = vmatpush1.bf16.msra.mxu0 %v2446_v24  ;;  %1516 = vmatpush1.bf16.msra.mxu1 %v2449_v25  ;;  %v2542_v24 = vld [vmem:[%s3419_s1 + $0x488] ss:$16 sps:$4 sm:$0xff]   ;;  %v2547_v25 = vld [vmem:[%s3419_s1 + $0x4a4] ss:$16 sps:$4 sm:$0xff]  }
  0x58   :  { %1345 = vmatprep.subr.bf16.mxu0 %v2454_v26  ;;  %1517 = vmatprep.subr.bf16.mxu1 %v2457_v27  ;;  %v2550_v26 = vld [vmem:[%s3419_s1 + $0x4ac] ss:$16 sps:$4 sm:$0xff]   ;;  %v2545_v27 = vld [vmem:[%s3419_s1 + $0x4a0] ss:$16 sps:$4 sm:$0xff]  }
  0x5b   :  { %1346 = vmatpush1.bf16.msra.mxu0 %v2452_v28  ;;  %1518 = vmatpush1.bf16.msra.mxu1 %v2455_v29  ;;  %v2548_v28 = vld [vmem:[%s3419_s1 + $0x4a8] ss:$16 sps:$4 sm:$0xff]   ;;  %v2553_v29 = vld [vmem:[%s3419_s1 + $0x4c4] ss:$16 sps:$4 sm:$0xff]  }
  0x5c   :  { %1347 = vmatprep.subr.bf16.mxu0 %v2460_v31  ;;  %1519 = vmatprep.subr.bf16.mxu1 %v2463_v32  ;;  %v2551_v31 = vld [vmem:[%s3419_s1 + $0x4c0] ss:$16 sps:$4 sm:$0xff]   ;;  %v2554_v32 = vld [vmem:[%s3419_s1 + $0x4c8] ss:$16 sps:$4 sm:$0xff]  }
  0x5f   :  { %1348 = vmatpush1.bf16.msra.mxu0 %v2458_v33  ;;  %1520 = vmatpush1.bf16.msra.mxu1 %v2461_v34  ;;  %v2559_v33 = vld [vmem:[%s3419_s1 + $0x4e4] ss:$16 sps:$4 sm:$0xff]   ;;  %v2562_v34 = vld [vmem:[%s3419_s1 + $0x4ec] ss:$16 sps:$4 sm:$0xff]  }
  0x60   :  { %1349 = vmatprep.subr.bf16.mxu0 %v2466_v35  ;;  %1521 = vmatprep.subr.bf16.mxu1 %v2469_v36  ;;  %v2557_v35 = vld [vmem:[%s3419_s1 + $0x4e0] ss:$16 sps:$4 sm:$0xff]   ;;  %v2560_v36 = vld [vmem:[%s3419_s1 + $0x4e8] ss:$16 sps:$4 sm:$0xff]  }
  0x63   :  { %1350 = vmatpush1.bf16.msra.mxu0 %v2464_v37  ;;  %1522 = vmatpush1.bf16.msra.mxu1 %v2467_v38  ;;  %v2565_v37 = vld [vmem:[%s3419_s1 + $0x504] ss:$16 sps:$4 sm:$0xff]   ;;  %v2568_v38 = vld [vmem:[%s3419_s1 + $0x50c] ss:$16 sps:$4 sm:$0xff]  }
  0x64   :  { %1351 = vmatprep.subr.bf16.mxu0 %v2472_v39  ;;  %1523 = vmatprep.subr.bf16.mxu1 %v2475_v40  ;;  %v2563_v39 = vld [vmem:[%s3419_s1 + $0x500] ss:$16 sps:$4 sm:$0xff]   ;;  %v2566_v40 = vld [vmem:[%s3419_s1 + $0x508] ss:$16 sps:$4 sm:$0xff]  }
  0x67   :  { %1352 = vmatpush1.bf16.msra.mxu0 %v2470_v41  ;;  %1524 = vmatpush1.bf16.msra.mxu1 %v2473_v42  ;;  %v2571_v41 = vld [vmem:[%s3419_s1 + $0x524] ss:$16 sps:$4 sm:$0xff]   ;;  %v2574_v42 = vld [vmem:[%s3419_s1 + $0x52c] ss:$16 sps:$4 sm:$0xff]  }
  0x68   :  { %1353 = vmatprep.subr.bf16.mxu0 %v2478_v43  ;;  %1525 = vmatprep.subr.bf16.mxu1 %v2481_v44  ;;  %v2569_v43 = vld [vmem:[%s3419_s1 + $0x520] ss:$16 sps:$4 sm:$0xff]   ;;  %v2572_v44 = vld [vmem:[%s3419_s1 + $0x528] ss:$16 sps:$4 sm:$0xff]  }
  0x6b   :  { %1354 = vmatpush1.bf16.msra.mxu0 %v2476_v45  ;;  %1526 = vmatpush1.bf16.msra.mxu1 %v2479_v46  ;;  %v2577_v45 = vld [vmem:[%s3419_s1 + $0x544] ss:$16 sps:$4 sm:$0xff]   ;;  %v2580_v46 = vld [vmem:[%s3419_s1 + $0x54c] ss:$16 sps:$4 sm:$0xff]  }
  0x6c   :  { %1355 = vmatprep.subr.bf16.mxu0 %v2484_v47  ;;  %1527 = vmatprep.subr.bf16.mxu1 %v2487_v48  ;;  %v2575_v47 = vld [vmem:[%s3419_s1 + $0x540] ss:$16 sps:$4 sm:$0xff]   ;;  %v2578_v48 = vld [vmem:[%s3419_s1 + $0x548] ss:$16 sps:$4 sm:$0xff]  }
  0x6f   :  { %1356 = vmatpush1.bf16.msra.mxu0 %v2482_v49  ;;  %1528 = vmatpush1.bf16.msra.mxu1 %v2485_v50  ;;  %v2583_v49 = vld [vmem:[%s3419_s1 + $0x564] ss:$16 sps:$4 sm:$0xff]   ;;  %v2586_v50 = vld [vmem:[%s3419_s1 + $0x56c] ss:$16 sps:$4 sm:$0xff]  }
  0x70   :  { %1357 = vmatprep.subr.bf16.mxu0 %v2490_v51  ;;  %1529 = vmatprep.subr.bf16.mxu1 %v2493_v52  ;;  %v2581_v51 = vld [vmem:[%s3419_s1 + $0x560] ss:$16 sps:$4 sm:$0xff]   ;;  %v2584_v52 = vld [vmem:[%s3419_s1 + $0x568] ss:$16 sps:$4 sm:$0xff]  }
  0x73   :  { %1358 = vmatpush1.bf16.msra.mxu0 %v2488_v53  ;;  %1530 = vmatpush1.bf16.msra.mxu1 %v2491_v54  ;;  %v2589_v53 = vld [vmem:[%s3419_s1 + $0x584] ss:$16 sps:$4 sm:$0xff]   ;;  %v2592_v54 = vld [vmem:[%s3419_s1 + $0x58c] ss:$16 sps:$4 sm:$0xff]  }
  0x74   :  { %1359 = vmatprep.subr.bf16.mxu0 %v2496_v55  ;;  %1531 = vmatprep.subr.bf16.mxu1 %v2499_v56  ;;  %v2587_v55 = vld [vmem:[%s3419_s1 + $0x580] ss:$16 sps:$4 sm:$0xff]   ;;  %v2590_v56 = vld [vmem:[%s3419_s1 + $0x588] ss:$16 sps:$4 sm:$0xff]  }
  0x77   :  { %1360 = vmatpush1.bf16.msra.mxu0 %v2494_v57  ;;  %1532 = vmatpush1.bf16.msra.mxu1 %v2497_v58  ;;  %v2595_v57 = vld [vmem:[%s3419_s1 + $0x5a4] ss:$16 sps:$4 sm:$0xff]   ;;  %v2598_v58 = vld [vmem:[%s3419_s1 + $0x5ac] ss:$16 sps:$4 sm:$0xff]  }
  0x78   :  { %1361 = vmatprep.subr.bf16.mxu0 %v2502_v59  ;;  %1533 = vmatprep.subr.bf16.mxu1 %v2505_v60  ;;  %v2593_v59 = vld [vmem:[%s3419_s1 + $0x5a0] ss:$16 sps:$4 sm:$0xff]   ;;  %v2596_v60 = vld [vmem:[%s3419_s1 + $0x5a8] ss:$16 sps:$4 sm:$0xff]  }
  0x7b   :  { %1362 = vmatpush1.bf16.msra.mxu0 %v2500_v61  ;;  %1534 = vmatpush1.bf16.msra.mxu1 %v2503_v62  ;;  %v2601_v61 = vld [vmem:[%s3419_s1 + $0x5c4] ss:$16 sps:$4 sm:$0xff]   ;;  %v2604_v62 = vld [vmem:[%s3419_s1 + $0x5cc] ss:$16 sps:$4 sm:$0xff]  }
  0x7c   :  { %1363 = vmatprep.subr.bf16.mxu0 %v2508_v63  ;;  %1535 = vmatprep.subr.bf16.mxu1 %v2511_v0  ;;  %v2599_v63 = vld [vmem:[%s3419_s1 + $0x5c0] ss:$16 sps:$4 sm:$0xff]   ;;  %v2602_v0 = vld [vmem:[%s3419_s1 + $0x5c8] ss:$16 sps:$4 sm:$0xff]  }
  0x7f   :  { %1364 = vmatpush1.bf16.msra.mxu0 %v2506_v1  ;;  %1536 = vmatpush1.bf16.msra.mxu1 %v2509_v2  ;;  %v2607_v1 = vld [vmem:[%s3419_s1 + $0x5e4] ss:$16 sps:$4 sm:$0xff]   ;;  %v2610_v2 = vld [vmem:[%s3419_s1 + $0x5ec] ss:$16 sps:$4 sm:$0xff]  }
  0x80   :  { %1376 = vmatprep.subr.bf16.mxu0 %v2517_v3  ;;  %1548 = vmatprep.subr.bf16.mxu1 %v2520_v4  ;;  %v2605_v3 = vld [vmem:[%s3419_s1 + $0x5e0] ss:$16 sps:$4 sm:$0xff]   ;;  %v2608_v4 = vld [vmem:[%s3419_s1 + $0x5e8] ss:$16 sps:$4 sm:$0xff]  }
  0x82   :  { %1366 = vmatmul.mubr.bf16.vlgmr.msra.gmra.mrb[0].mxu0 %v2512_v5  ;;  %1538 = vmatmul.mubr.bf16.vlgmr.msra.gmra.mrb[0].mxu1 %v2512_v5  ;;  %v2616_v5 = vld [vmem:[%s3419_s1 + $0x604] ss:$16 sps:$4 sm:$0xff]  }
  0x83   :  { %1377 = vmatpush1.bf16.msra.mxu0 %v2515_v6  ;;  %1549 = vmatpush1.bf16.msra.mxu1 %v2518_v7  ;;  %v2619_v6 = vld [vmem:[%s3419_s1 + $0x60c] ss:$16 sps:$4 sm:$0xff]  }
  0x84   :  { %1378 = vmatprep.subr.bf16.mxu0 %v2523_v8  ;;  %1550 = vmatprep.subr.bf16.mxu1 %v2526_v9  ;;  %v2611_v7 = vld [vmem:[%s3420_s0 + $0x10] ss:$28 sps:$4 sm:$0xff]   ;;  %v2617_v9 = vld [vmem:[%s3419_s1 + $0x608] ss:$16 sps:$4 sm:$0xff]  }
  0x85   :  { %1408 = vmatprep.mubr.bf16.mxu0 %v2613_v12  ;;  %1580 = vmatprep.mubr.bf16.mxu1 %v2613_v12  ;;  %v2614_v8 = vld [vmem:[%s3419_s1 + $0x600] ss:$16 sps:$4 sm:$0xff]  }
  0x86   :  { %v2620_v12 = vld [vmem:[%s3419_s1 + $0x620] ss:$16 sps:$4 sm:$0xff]  }
  0x87   :  { %1379 = vmatpush1.bf16.msra.mxu0 %v2521_v10  ;;  %1551 = vmatpush1.bf16.msra.mxu1 %v2524_v11  ;;  %v2622_v10 = vld [vmem:[%s3419_s1 + $0x624] ss:$16 sps:$4 sm:$0xff]   ;;  %v2625_v11 = vld [vmem:[%s3419_s1 + $0x62c] ss:$16 sps:$4 sm:$0xff]  }
  0x88   :  { %1380 = vmatprep.subr.bf16.mxu0 %v2529_v13  ;;  %1552 = vmatprep.subr.bf16.mxu1 %v2532_v14  ;;  %v2623_v13 = vld [vmem:[%s3419_s1 + $0x628] ss:$16 sps:$4 sm:$0xff]   ;;  %v2627_v14 = vld [vmem:[%s3421_s3 + $0x40] sm:$0xff]  }
  0x8b   :  { %1381 = vmatpush1.bf16.msra.mxu0 %v2527_v15  ;;  %1553 = vmatpush1.bf16.msra.mxu1 %v2530_v16  ;;  %v2628_v15 = vld [vmem:[%s3421_s3 + $0xc0] sm:$0xff]   ;;  %v2659_v16 = vmov 0  }
  0x8c   :  { %1382 = vmatprep.subr.bf16.mxu0 %v2535_v17  ;;  %1554 = vmatprep.subr.bf16.mxu1 %v2538_v18  ;;  %v2626_v17 = vld [vmem:[%s3420_s0 + $0x18] ss:$28 sps:$4 sm:$0xff]   ;;  %v2629_v18 = vld [vmem:[%s3421_s3] sm:$0xff]  }
  0x8f   :  { %1383 = vmatpush1.bf16.msra.mxu0 %v2533_v19  ;;  %1555 = vmatpush1.bf16.msra.mxu1 %v2536_v20  ;;  %v2630_v19 = vld [vmem:[%s3421_s3 + $0x80] sm:$0xff]   ;;  %v2631_v20 = vld [vmem:[%s3421_s3 + $0x48] sm:$0xff]  }
  0x90   :  { %1384 = vmatprep.subr.bf16.mxu0 %v2541_v21  ;;  %1556 = vmatprep.subr.bf16.mxu1 %v2544_v22  ;;  %v2632_v21 = vld [vmem:[%s3421_s3 + $0xc8] sm:$0xff]  }
  0x91   :  { %v2633_v22 = vld [vmem:[%s3421_s3 + $0x8] sm:$0xff]  }
  0x93   :  { %1385 = vmatpush1.bf16.msra.mxu0 %v2539_v23  ;;  %1557 = vmatpush1.bf16.msra.mxu1 %v2542_v24  ;;  %v2634_v23 = vld [vmem:[%s3421_s3 + $0x88] sm:$0xff]   ;;  %v2635_v24 = vld [vmem:[%s3421_s3 + $0x50] sm:$0xff]  }
  0x94   :  { %1386 = vmatprep.subr.bf16.mxu0 %v2547_v25  ;;  %1558 = vmatprep.subr.bf16.mxu1 %v2550_v26  ;;  %v2636_v25 = vld [vmem:[%s3421_s3 + $0xd0] sm:$0xff]  }
  0x95   :  { %v2637_v26 = vld [vmem:[%s3421_s3 + $0x10] sm:$0xff]  }
  0x97   :  { %1387 = vmatpush1.bf16.msra.mxu0 %v2545_v27  ;;  %1559 = vmatpush1.bf16.msra.mxu1 %v2548_v28  ;;  %v2638_v27 = vld [vmem:[%s3421_s3 + $0x90] sm:$0xff]   ;;  %v2639_v28 = vld [vmem:[%s3421_s3 + $0x58] sm:$0xff]  }
  0x98   :  { %1388 = vmatprep.subr.bf16.mxu0 %v2553_v29  ;;  %1560 = vmatprep.subr.bf16.mxu1 %v2556_v30  ;;  %v2640_v29 = vld [vmem:[%s3421_s3 + $0xd8] sm:$0xff]  }
  0x99   :  { %v2641_v30 = vld [vmem:[%s3421_s3 + $0x18] sm:$0xff]  }
  0x9b   :  { %1389 = vmatpush1.bf16.msra.mxu0 %v2551_v31  ;;  %1561 = vmatpush1.bf16.msra.mxu1 %v2554_v32  ;;  %v2642_v31 = vld [vmem:[%s3421_s3 + $0x98] sm:$0xff]   ;;  %v2643_v32 = vld [vmem:[%s3421_s3 + $0x60] sm:$0xff]  }
  0x9c   :  { %1390 = vmatprep.subr.bf16.mxu0 %v2559_v33  ;;  %1562 = vmatprep.subr.bf16.mxu1 %v2562_v34  ;;  %v2644_v33 = vld [vmem:[%s3421_s3 + $0xe0] sm:$0xff]  }
  0x9d   :  { %v2645_v34 = vld [vmem:[%s3421_s3 + $0x20] sm:$0xff]  }
  0x9f   :  { %1391 = vmatpush1.bf16.msra.mxu0 %v2557_v35  ;;  %1563 = vmatpush1.bf16.msra.mxu1 %v2560_v36  ;;  %v2646_v35 = vld [vmem:[%s3421_s3 + $0xa0] sm:$0xff]   ;;  %v2647_v36 = vld [vmem:[%s3421_s3 + $0x68] sm:$0xff]  }
  0xa0   :  { %1392 = vmatprep.subr.bf16.mxu0 %v2565_v37  ;;  %1564 = vmatprep.subr.bf16.mxu1 %v2568_v38  ;;  %v2648_v37 = vld [vmem:[%s3421_s3 + $0xe8] sm:$0xff]  }
  0xa1   :  { %v2649_v38 = vld [vmem:[%s3421_s3 + $0x28] sm:$0xff]  }
  0xa3   :  { %1393 = vmatpush1.bf16.msra.mxu0 %v2563_v39  ;;  %1565 = vmatpush1.bf16.msra.mxu1 %v2566_v40  ;;  %v2650_v39 = vld [vmem:[%s3421_s3 + $0xa8] sm:$0xff]   ;;  %v2651_v40 = vld [vmem:[%s3421_s3 + $0x70] sm:$0xff]  }
  0xa4   :  { %1394 = vmatprep.subr.bf16.mxu0 %v2571_v41  ;;  %1566 = vmatprep.subr.bf16.mxu1 %v2574_v42  ;;  %v2652_v41 = vld [vmem:[%s3421_s3 + $0xf0] sm:$0xff]  }
  0xa5   :  { %v2653_v42 = vld [vmem:[%s3421_s3 + $0x30] sm:$0xff]  }
  0xa7   :  { %1395 = vmatpush1.bf16.msra.mxu0 %v2569_v43  ;;  %1567 = vmatpush1.bf16.msra.mxu1 %v2572_v44  ;;  %v2654_v43 = vld [vmem:[%s3421_s3 + $0xb0] sm:$0xff]   ;;  %v2655_v44 = vld [vmem:[%s3421_s3 + $0x78] sm:$0xff]  }
  0xa8   :  { %1396 = vmatprep.subr.bf16.mxu0 %v2577_v45  ;;  %1568 = vmatprep.subr.bf16.mxu1 %v2580_v46  ;;  %v2656_v45 = vld [vmem:[%s3421_s3 + $0xf8] sm:$0xff]  }
  0xa9   :  { %v2657_v46 = vld [vmem:[%s3421_s3 + $0x38] sm:$0xff]  }
  0xab   :  { %1397 = vmatpush1.bf16.msra.mxu0 %v2575_v47  ;;  %1569 = vmatpush1.bf16.msra.mxu1 %v2578_v48  ;;  %v2658_v47 = vld [vmem:[%s3421_s3 + $0xb8] sm:$0xff]   ;;  %v231_v48 = vlaneseq }
  0xac   :  { %1398 = vmatprep.subr.bf16.mxu0 %v2583_v49  ;;  %1570 = vmatprep.subr.bf16.mxu1 %v2586_v50 }
  0xad   :  { %v232_v49 = vshrl.u32 %v231_v48, 7 }
  0xaf   :  { %1399 = vmatpush1.bf16.msra.mxu0 %v2581_v51  ;;  %1571 = vmatpush1.bf16.msra.mxu1 %v2584_v52  ;;  %v233_v50 = vsub.s32 0, %v232_v49  ;;  %v241_v51 = vsub.s32 2, %v232_v49  ;;  %v229_v52 = vld [vmem:[%s3422_s2] sm:$0xf] }
  0xb0   :  { %1400 = vmatprep.subr.bf16.mxu0 %v2589_v53  ;;  %1572 = vmatprep.subr.bf16.mxu1 %v2592_v54  ;;  %v237_v53 = vsub.s32 1, %v232_v49  ;;  %v245_v54 = vsub.s32 3, %v232_v49 }
  0xb3   :  { %1401 = vmatpush1.bf16.msra.mxu0 %v2587_v55  ;;  %1573 = vmatpush1.bf16.msra.mxu1 %v2590_v56  ;;  %v234_v55 = vrot.slane %v229_v52, %v233_v50  ;;  %v242_v56 = vrot.slane %v229_v52, %v241_v51 }
  0xb4   :  { %1402 = vmatprep.subr.bf16.mxu0 %v2595_v57  ;;  %1574 = vmatprep.subr.bf16.mxu1 %v2598_v58  ;;  %v238_v57 = vrot.slane %v229_v52, %v237_v53  ;;  %v246_v58 = vrot.slane %v229_v52, %v245_v54 }
  0xb7   :  { %1403 = vmatpush1.bf16.msra.mxu0 %v2593_v59  ;;  %1575 = vmatpush1.bf16.msra.mxu1 %v2596_v60 }
  0xb8   :  { %1404 = vmatprep.subr.bf16.mxu0 %v2601_v61  ;;  %1576 = vmatprep.subr.bf16.mxu1 %v2604_v62 }
  0xbb   :  { %1405 = vmatpush1.bf16.msra.mxu0 %v2599_v63  ;;  %1577 = vmatpush1.bf16.msra.mxu1 %v2602_v0 }
  0xbc   :  { %1406 = vmatprep.subr.bf16.mxu0 %v2607_v1  ;;  %1578 = vmatprep.subr.bf16.mxu1 %v2610_v2 }
  0xbf   :  { %1407 = vmatpush1.bf16.msra.mxu0 %v2605_v3  ;;  %1579 = vmatpush1.bf16.msra.mxu1 %v2608_v4 }
  0xc0   :  { %1419 = vmatprep.subr.bf16.mxu0 %v2616_v5  ;;  %1591 = vmatprep.subr.bf16.mxu1 %v2619_v6 }
  0xc2   :  { %1409 = vmatmul.mubr.bf16.vlgmr.msra.gmra.mrb[0].mxu0 %v2611_v7  ;;  %1581 = vmatmul.mubr.bf16.vlgmr.msra.gmra.mrb[0].mxu1 %v2611_v7 }
  0xc3   :  { %1420 = vmatpush1.bf16.msra.mxu0 %v2614_v8  ;;  %1592 = vmatpush1.bf16.msra.mxu1 %v2617_v9 }
  0xc4   :  { %1421 = vmatprep.subr.bf16.mxu0 %v2622_v10  ;;  %1593 = vmatprep.subr.bf16.mxu1 %v2625_v11 }
  0xc5   :  { %1451 = vmatprep.mubr.bf16.mxu0 %v2659_v16  ;;  %1623 = vmatprep.mubr.bf16.mxu1 %v2659_v16 }
  0xc7   :  { %1422 = vmatpush1.bf16.msra.mxu0 %v2620_v12  ;;  %1594 = vmatpush1.bf16.msra.mxu1 %v2623_v13 }
  0xc8   :  { %2240 = vmatprep.subr.bf16.mxu0 %v2627_v14  ;;  %2262 = vmatprep.subr.bf16.mxu1 %v2628_v15 }
  0xce   :  { %2205 = vmatmul.mubr.msk.bf16.vlgmr.msra.gmra.mrb[0].mxu0 %vm1286_vm0, %v2626_v17  ;;  %2206 = vmatmul.mubr.msk.bf16.vlgmr.msra.gmra.mrb[0].mxu1 %vm1286_vm0, %v2626_v17 }
  0xcf   :  { %2241 = vmatpush3.bf16.msra.mxu0 %v2629_v18  ;;  %2263 = vmatpush3.bf16.msra.mxu1 %v2630_v19 }
  0xd0   :  { %2242 = vmatprep.subr.bf16.mxu0 %v2631_v20  ;;  %2264 = vmatprep.subr.bf16.mxu1 %v2632_v21 }
  0xd3   :  { %2243 = vmatpush3.bf16.msra.mxu0 %v2633_v22  ;;  %2265 = vmatpush3.bf16.msra.mxu1 %v2634_v23 }
  0xd4   :  { %2244 = vmatprep.subr.bf16.mxu0 %v2635_v24  ;;  %2266 = vmatprep.subr.bf16.mxu1 %v2636_v25  ;;  %v2207_v25 = vld [vmem:[%s3423_s4] ss:$0 sm:$0xff] }
  0xd7   :  { %2245 = vmatpush3.bf16.msra.mxu0 %v2637_v26  ;;  %2267 = vmatpush3.bf16.msra.mxu1 %v2638_v27 }
  0xd8   :  { %2246 = vmatprep.subr.bf16.mxu0 %v2639_v28  ;;  %2268 = vmatprep.subr.bf16.mxu1 %v2640_v29 }
  0xdb   :  { %2247 = vmatpush3.bf16.msra.mxu0 %v2641_v30  ;;  %2269 = vmatpush3.bf16.msra.mxu1 %v2642_v31 }
  0xdc   :  { %2248 = vmatprep.subr.bf16.mxu0 %v2643_v32  ;;  %2270 = vmatprep.subr.bf16.mxu1 %v2644_v33 }
  0xdf   :  { %2249 = vmatpush3.bf16.msra.mxu0 %v2645_v34  ;;  %2271 = vmatpush3.bf16.msra.mxu1 %v2646_v35 }
  0xe0   :  { %2250 = vmatprep.subr.bf16.mxu0 %v2647_v36  ;;  %2272 = vmatprep.subr.bf16.mxu1 %v2648_v37 }
  0xe3   :  { %2251 = vmatpush3.bf16.msra.mxu0 %v2649_v38  ;;  %2273 = vmatpush3.bf16.msra.mxu1 %v2650_v39 }
  0xe4   :  { %2252 = vmatprep.subr.bf16.mxu0 %v2651_v40  ;;  %2274 = vmatprep.subr.bf16.mxu1 %v2652_v41 }
  0xe7   :  { %2253 = vmatpush3.bf16.msra.mxu0 %v2653_v42  ;;  %2275 = vmatpush3.bf16.msra.mxu1 %v2654_v43 }
  0xe8   :  { %2254 = vmatprep.subr.bf16.mxu0 %v2655_v44  ;;  %2276 = vmatprep.subr.bf16.mxu1 %v2656_v45 }
  0xeb   :  { %2255 = vmatpush3.bf16.msra.mxu0 %v2657_v46  ;;  %2277 = vmatpush3.bf16.msra.mxu1 %v2658_v47 }
 0x1a1   :  { %v1453_v59 = vpop.f32.mrb[0].mxu0  ;;  %v1625_v60 = vpop.f32.mrb[0].mxu1 }
 0x1a2   :  { %v2284_v61 = vadd.f32 %v1453_v59, %v234_v55  ;;  %v2288_v62 = vadd.f32 %v1625_v60, %v242_v56  ;;  %v1455_v63 = vpop.f32.mrb[1].mxu0  ;;  %v1627_v0 = vpop.f32.mrb[1].mxu1 }
 0x1a3   :  { %v2285_v1 = vadd.f32 %v1455_v63, %v238_v57  ;;  %v2289_v2 = vadd.f32 %v1627_v0, %v246_v58  ;;  %v1457_v3 = vpop.f32.mrb[2].mxu0  ;;  %v1629_v4 = vpop.f32.mrb[2].mxu1 }
 0x1a4   :  { %v2286_v5 = vadd.f32 %v1457_v3, %v234_v55  ;;  %v2290_v6 = vadd.f32 %v1629_v4, %v242_v56  ;;  %v1459_v7 = vpop.f32.mrb[3].mxu0  ;;  %v1631_v8 = vpop.f32.mrb[3].mxu1  ;;  %v1634_v11 = vmax.f32 %v2284_v61, 0.0  ;;  %v1636_v12 = vmax.f32 %v2288_v62, 0.0 }
 0x1a5   :  { %v2287_v9 = vadd.f32 %v1459_v7, %v238_v57  ;;  %v2291_v10 = vadd.f32 %v1631_v8, %v246_v58  ;;  %v1635_v15 = vmax.f32 %v2285_v1, 0.0  ;;  %v1637_v16 = vmax.f32 %v2289_v2, 0.0 }
 0x1a6   :  { %v1638_v13 = vmax.f32 %v2286_v5, 0.0  ;;  %v1640_v14 = vmax.f32 %v2290_v6, 0.0 }
 0x1a7   :  { %v1639_v17 = vmax.f32 %v2287_v9, 0.0  ;;  %v1641_v18 = vmax.f32 %v2291_v10, 0.0 }
 0x1a8   :  { %v1642_v19 = vpack.c.bf16 %v1638_v13, %v1634_v11  ;;  %v1644_v20 = vpack.c.bf16 %v1640_v14, %v1636_v12 }
 0x1a9   :  { %v1643_v21 = vpack.c.bf16 %v1639_v17, %v1635_v15  ;;  %v1645_v22 = vpack.c.bf16 %v1641_v18, %v1637_v16 }
 0x1ab   :  { %1941 = vmatprep.mubr.bf16.mxu0 %v1643_v21  ;;  %1982 = vmatprep.mubr.bf16.mxu1 %v1645_v22 }
 0x1ac   :  { %1942 = vmatmul.mubr.bf16.vlgmr.msra.gmra.mrb[4].mxu0 %v1642_v19  ;;  %1983 = vmatmul.mubr.bf16.vlgmr.msra.gmra.mrb[4].mxu1 %v1644_v20 }
 0x27f   :  { %v2256_v23 = vpop.f32.mrb[4].mxu0  ;;  %v2278_v24 = vpop.f32.mrb[4].mxu1 }
 0x280   :  { %v2257_v26 = vpop.f32.mrb[5].mxu0  ;;  %v2279_v27 = vpop.f32.mrb[5].mxu1 }
 0x281   :  { %v2258_v28 = vadd.f32 %v2257_v26, %v2256_v23  ;;  %v2280_v29 = vadd.f32 %v2279_v27, %v2278_v24  ;;  %v2259_v30 = vpop.f32.mrb[6].mxu0  ;;  %v2281_v31 = vpop.f32.mrb[6].mxu1 }
 0x282   :  { %v2260_v32 = vpop.f32.mrb[7].mxu0  ;;  %v2282_v33 = vpop.f32.mrb[7].mxu1 }
 0x283   :  { %v1944_v34 = vadd.f32 %v2258_v28, %v2207_v25  ;;  %v2261_v35 = vadd.f32 %v2260_v32, %v2259_v30  ;;  %v2283_v36 = vadd.f32 %v2282_v33, %v2281_v31 }
 0x285   :  { %v1985_v37 = vadd.f32 %v2280_v29, %v1944_v34  ;;  %v1947_v38 = vadd.f32 %v2261_v35, %v2207_v25 }
 0x287   :  { %1992 = vst.msk [vmem:[%s3424_s5] sm:$0xff] %vm1991_vm1, %v1985_v37  ;;  %v1988_v39 = vadd.f32 %v2283_v36, %v1947_v38 }
 0x289   :  { %1993 = vst.msk [vmem:[%s3424_s5 + $0x8] sm:$0xff] %vm1991_vm1, %v1988_v39 }

</bundles_post_ra>
